<compile_context>
chip_gen: v5e
topology: v5e:2x2
jax: 0.10.0
libtpu: 0.0.40
codegen_flags: <defaults>
</compile_context>

<pallas_src>
import numpy as np
import jax
import jax.numpy as jnp
from jax.experimental import pallas as pl
from jax.experimental.pallas import tpu as pltpu


# ----------------------------------------------------------------------------
# BERT stand-in (glue, plain JAX)
# ----------------------------------------------------------------------------
def bert_last_hidden_state(input_ids, attention_mask, word_emb, pos_emb):
    # TODO(synk): pretrained BERT encoder is not replicated; a deterministic
    # word + positional embedding lookup stands in for outputs.last_hidden_state.
    # attention_mask only affects attention inside BERT, so it is unused here.
    del attention_mask
    S = input_ids.shape[1]
    return word_emb[input_ids] + pos_emb[None, :S, :]


# ----------------------------------------------------------------------------
# Fused kernel: bidirectional-GRU-last + TextCNN (all k) + FC, one batch row
# per grid step.
# ----------------------------------------------------------------------------
def _make_fused_kernel(S, H, Hg, F, kernel_sizes):
    kmax = max(kernel_sizes)

    def gru_gates(gi, gh, h):
        # PyTorch GRU gate order (r, z, n); all gate math kept in float32.
        r = jax.nn.sigmoid(gi[:, :Hg] + gh[:, :Hg])
        z = jax.nn.sigmoid(gi[:, Hg:2 * Hg] + gh[:, Hg:2 * Hg])
        n = jnp.tanh(gi[:, 2 * Hg:] + r * gh[:, 2 * Hg:])
        return (1.0 - z) * n + z * h

    def kernel(x_ref, wihf_ref, whhf_ref, bihf_ref, bhhf_ref,
               wihb_ref, bihb_ref, bhhb_ref,
               wconv_ref, bconv_ref, mask_ref,
               wfc_ref, bfc_ref, out_ref):
        x = x_ref[0]                                  # (S, H) float32
        x_bf = x.astype(jnp.bfloat16)                 # MXU operand

        # ---- forward GRU: input-hidden matmul hoisted out of the loop ----
        gi_all = jnp.dot(x_bf, wihf_ref[...],
                         preferred_element_type=jnp.float32) + bihf_ref[...]
        whh_f = whhf_ref[...]
        bhh_f = bhhf_ref[...]
        h = jnp.zeros((1, Hg), jnp.float32)
        for t in range(S):                            # static, fully unrolled
            gi = gi_all[t:t + 1, :]                   # static slice, no relayout loop
            gh = jnp.dot(h.astype(jnp.bfloat16), whh_f,
                         preferred_element_type=jnp.float32) + bhh_f
            h = gru_gates(gi, gh, h)
        h_fwd = h                                     # (1, Hg)

        # ---- backward GRU output at position S-1: one step from h0 = 0 ----
        # (gru_out[:, -1, :] backward half == first reverse step; h0 @ whh_b = 0)
        x_last_bf = x[S - 1:S, :].astype(jnp.bfloat16)
        gi_b = jnp.dot(x_last_bf, wihb_ref[...],
                       preferred_element_type=jnp.float32) + bihb_ref[...]
        h_bwd = gru_gates(gi_b, bhhb_ref[...],
                          jnp.zeros((1, Hg), jnp.float32))

        # ---- TextCNN: all kernel sizes as ONE im2col matmul ----
        parts = [x]
        for j in range(1, kmax):
            parts.append(jnp.concatenate(
                [x[j:, :], jnp.zeros((j, H), jnp.float32)], axis=0))
        slab = jnp.concatenate(parts, axis=1).astype(jnp.bfloat16)   # (S, kmax*H)
        conv = jnp.dot(slab, wconv_ref[...],
                       preferred_element_type=jnp.float32) + bconv_ref[...]
        conv = jnp.maximum(conv, 0.0) * mask_ref[...]  # ReLU then mask invalid t
        cnn = jnp.max(conv, axis=0, keepdims=True)     # (1, nK*F) max over time

        # ---- FC: split-weight matmul (no lane-axis concatenation) ----
        wfc = wfc_ref[...]
        logits = (jnp.dot(h_fwd.astype(jnp.bfloat16), wfc[:Hg, :],
                          preferred_element_type=jnp.float32)
                  + jnp.dot(h_bwd.astype(jnp.bfloat16), wfc[Hg:2 * Hg, :],
                            preferred_element_type=jnp.float32)
                  + jnp.dot(cnn.astype(jnp.bfloat16), wfc[2 * Hg:, :],
                            preferred_element_type=jnp.float32)
                  + bfc_ref[...])
        out_ref[...] = logits.reshape(1, 1, -1)

    return kernel


def robert_fusion_head_pallas(lhs, params, kernel_sizes):
    B, S, H = lhs.shape
    Hg = params["gru_whh_f"].shape[0]
    F = params[f"conv{kernel_sizes[0]}_w"].shape[2]
    nK = len(kernel_sizes)
    kmax = max(kernel_sizes)
    out_dim = params["fc_w"].shape[1]
    bf16 = jnp.bfloat16

    # Fuse every conv's weight into one lane-dense (kmax*H, nK*F) matrix
    # (zero-padded rows for kernels shorter than kmax) + fused bias.
    w_cols, b_cols = [], []
    for k in kernel_sizes:
        w = params[f"conv{k}_w"].reshape(k * H, F)
        pad = jnp.zeros(((kmax - k) * H, F), w.dtype)
        w_cols.append(jnp.concatenate([w, pad], axis=0))
        b_cols.append(params[f"conv{k}_b"])
    w_conv = jnp.concatenate(w_cols, axis=1).astype(bf16)   # (kmax*H, nK*F)
    b_conv = jnp.concatenate(b_cols, axis=1)                # (1, nK*F) f32

    # Validity mask: position t is a valid "valid-conv" position for kernel k
    # iff t <= S - k.  Invalid positions are zeroed after ReLU (max is >= 0).
    lvec = np.repeat(np.array([S - k + 1 for k in kernel_sizes], np.int64), F)
    mask = jnp.asarray((np.arange(S)[:, None] < lvec[None, :]).astype(np.float32))

    w_ih_f = params["gru_wih_f"].astype(bf16)
    w_hh_f = params["gru_whh_f"].astype(bf16)
    w_ih_b = params["gru_wih_b"].astype(bf16)
    # NOTE: gru_whh_b never influences gru_out[:, -1, :] (the backward
    # direction starts from h0 = 0 at position S-1), so it is not passed.
    w_fc = params["fc_w"].astype(bf16)

    kernel = _make_fused_kernel(S, H, Hg, F, tuple(kernel_sizes))

    def full(a):
        return pl.BlockSpec(a.shape, lambda b, nd=a.ndim: (0,) * nd)

    inputs = (lhs, w_ih_f, w_hh_f, params["gru_bih_f"], params["gru_bhh_f"],
              w_ih_b, params["gru_bih_b"], params["gru_bhh_b"],
              w_conv, b_conv, mask, w_fc, params["fc_b"])

    logits3 = pl.pallas_call(
        kernel,
        out_shape=jax.ShapeDtypeStruct((B, 1, out_dim), jnp.float32),
        grid=(B,),
        in_specs=[pl.BlockSpec((1, S, H), lambda b: (b, 0, 0))]
                 + [full(a) for a in inputs[1:]],
        out_specs=pl.BlockSpec((1, 1, out_dim), lambda b: (b, 0, 0)),
        compiler_params=pltpu.CompilerParams(
            dimension_semantics=("parallel",)),
    )(*inputs)
    return logits3.reshape(B, out_dim)


# ----------------------------------------------------------------------------
# Full forward
# ----------------------------------------------------------------------------
def robert_fusion_forward(input_ids, attention_mask, params, kernel_sizes):
    lhs = bert_last_hidden_state(input_ids, attention_mask,
                                 params["word_emb"], params["pos_emb"])
    return robert_fusion_head_pallas(lhs, params, kernel_sizes)


# ----------------------------------------------------------------------------
# Deterministic parameter construction + run
# ----------------------------------------------------------------------------
if __name__ == "__main__":
    B, S, H = 2, 8, 32          # batch, seq, bert hidden size
    Hg = 16                     # gru_hidden_size
    F = 8                       # num_filters
    KS = (3, 4, 5)              # kernel_sizes
    VOCAB = 64

    key = jax.random.PRNGKey(0)
    keys = jax.random.split(key, 24)
    ki = iter(range(24))

    def nrm(shape, scale=0.05):
        return (scale * jax.random.normal(keys[next(ki)], shape)).astype(jnp.float32)

    params = {
        "word_emb": nrm((VOCAB, H), 0.5),
        "pos_emb": nrm((S, H), 0.5),
        # GRU weights stored transposed vs. PyTorch: [in, 3*Hg], gate order (r,z,n)
        "gru_wih_f": nrm((H, 3 * Hg)), "gru_whh_f": nrm((Hg, 3 * Hg)),
        "gru_bih_f": nrm((1, 3 * Hg)), "gru_bhh_f": nrm((1, 3 * Hg)),
        "gru_wih_b": nrm((H, 3 * Hg)), "gru_whh_b": nrm((Hg, 3 * Hg)),
        "gru_bih_b": nrm((1, 3 * Hg)), "gru_bhh_b": nrm((1, 3 * Hg)),
        # fc: feature order [gru_fwd, gru_bwd, conv_k for k in KS]
        "fc_w": nrm((2 * Hg + F * len(KS), 2)),
        "fc_b": nrm((1, 2)),
    }
    for k in KS:
        # Conv2d(1, F, (k, H)) weights stored as [k, H, F]
        params[f"conv{k}_w"] = nrm((k, H, F))
        params[f"conv{k}_b"] = nrm((1, F))

    input_ids = jax.random.randint(jax.random.PRNGKey(1), (B, S), 0, VOCAB)
    attention_mask = jnp.ones((B, S), dtype=jnp.int32)

    logits = robert_fusion_forward(input_ids, attention_mask, params, KS)
    jax.block_until_ready(logits)
    assert logits.shape == (B, 2) and logits.dtype == jnp.float32
    assert bool(jnp.all(jnp.isfinite(logits)))
    print("KERNEL_OK")
</pallas_src>

<mosaic_0001>
module attributes {stable_mosaic.version = 11 : i64} {
  func.func @kernel(%arg0: i32, %arg1: memref<1x8x32xf32, #tpu.memory_space<vmem>>, %arg2: memref<32x48xbf16, #tpu.memory_space<vmem>>, %arg3: memref<16x48xbf16, #tpu.memory_space<vmem>>, %arg4: memref<1x48xf32, #tpu.memory_space<vmem>>, %arg5: memref<1x48xf32, #tpu.memory_space<vmem>>, %arg6: memref<32x48xbf16, #tpu.memory_space<vmem>>, %arg7: memref<1x48xf32, #tpu.memory_space<vmem>>, %arg8: memref<1x48xf32, #tpu.memory_space<vmem>>, %arg9: memref<160x24xbf16, #tpu.memory_space<vmem>>, %arg10: memref<1x24xf32, #tpu.memory_space<vmem>>, %arg11: memref<8x24xf32, #tpu.memory_space<vmem>>, %arg12: memref<56x2xbf16, #tpu.memory_space<vmem>>, %arg13: memref<1x2xf32, #tpu.memory_space<vmem>>, %arg14: memref<1x1x2xf32, #tpu.memory_space<vmem>>) attributes {dimension_semantics = [#tpu.dimension_semantics<parallel>], iteration_bounds = array<i64: 2>, scalar_prefetch = 0 : i64, scratch_operands = 0 : i64, tpu.core_type = #tpu.core_type<tc>, window_params = [{transform_indices = @transform_0, window_bounds = array<i64: 1, 8, 32>}, {pipeline_mode = #tpu.pipeline_mode<synchronous>, transform_indices = @transform_1, window_bounds = array<i64: 32, 48>}, {pipeline_mode = #tpu.pipeline_mode<synchronous>, transform_indices = @transform_2, window_bounds = array<i64: 16, 48>}, {pipeline_mode = #tpu.pipeline_mode<synchronous>, transform_indices = @transform_3, window_bounds = array<i64: 1, 48>}, {pipeline_mode = #tpu.pipeline_mode<synchronous>, transform_indices = @transform_4, window_bounds = array<i64: 1, 48>}, {pipeline_mode = #tpu.pipeline_mode<synchronous>, transform_indices = @transform_5, window_bounds = array<i64: 32, 48>}, {pipeline_mode = #tpu.pipeline_mode<synchronous>, transform_indices = @transform_6, window_bounds = array<i64: 1, 48>}, {pipeline_mode = #tpu.pipeline_mode<synchronous>, transform_indices = @transform_7, window_bounds = array<i64: 1, 48>}, {pipeline_mode = #tpu.pipeline_mode<synchronous>, transform_indices = @transform_8, window_bounds = array<i64: 160, 24>}, {pipeline_mode = #tpu.pipeline_mode<synchronous>, transform_indices = @transform_9, window_bounds = array<i64: 1, 24>}, {pipeline_mode = #tpu.pipeline_mode<synchronous>, transform_indices = @transform_10, window_bounds = array<i64: 8, 24>}, {pipeline_mode = #tpu.pipeline_mode<synchronous>, transform_indices = @transform_11, window_bounds = array<i64: 56, 2>}, {pipeline_mode = #tpu.pipeline_mode<synchronous>, transform_indices = @transform_12, window_bounds = array<i64: 1, 2>}, {transform_indices = @transform_13, window_bounds = array<i64: 1, 1, 2>}]} {
    %c0 = arith.constant 0 : index
    %c0_0 = arith.constant 0 : index
    %c0_1 = arith.constant 0 : index
    %0 = vector.load %arg1[%c0, %c0_0, %c0_1] : memref<1x8x32xf32, #tpu.memory_space<vmem>>, vector<1x8x32xf32>
    %1 = vector.shape_cast %0 : vector<1x8x32xf32> to vector<8x32xf32>
    %2 = arith.truncf %1 : vector<8x32xf32> to vector<8x32xbf16>
    %c0_2 = arith.constant 0 : index
    %c0_3 = arith.constant 0 : index
    %3 = vector.load %arg2[%c0_2, %c0_3] : memref<32x48xbf16, #tpu.memory_space<vmem>>, vector<32x48xbf16>
    %cst = arith.constant dense<0.000000e+00> : vector<8x48xf32>
    %4 = tpu.matmul %2, %3, %cst {dimension_numbers = #tpu.dot_dimension_numbers<[1], [0], [0], [1], [0, 0, 1, 1], [], []>} : vector<8x32xbf16>, vector<32x48xbf16>, vector<8x48xf32> -> vector<8x48xf32>
    %c0_4 = arith.constant 0 : index
    %c0_5 = arith.constant 0 : index
    %5 = vector.load %arg4[%c0_4, %c0_5] : memref<1x48xf32, #tpu.memory_space<vmem>>, vector<1x48xf32>
    %6 = vector.broadcast %5 : vector<1x48xf32> to vector<8x48xf32>
    %7 = arith.addf %4, %6 : vector<8x48xf32>
    %c0_6 = arith.constant 0 : index
    %c0_7 = arith.constant 0 : index
    %8 = vector.load %arg3[%c0_6, %c0_7] : memref<16x48xbf16, #tpu.memory_space<vmem>>, vector<16x48xbf16>
    %c0_8 = arith.constant 0 : index
    %c0_9 = arith.constant 0 : index
    %9 = vector.load %arg5[%c0_8, %c0_9] : memref<1x48xf32, #tpu.memory_space<vmem>>, vector<1x48xf32>
    %cst_10 = arith.constant 0.000000e+00 : f32
    %10 = vector.broadcast %cst_10 : f32 to vector<1x16xf32>
    %11 = vector.extract_strided_slice %7 {offsets = [0, 0], sizes = [1, 48], strides = [1, 1]} : vector<8x48xf32> to vector<1x48xf32>
    %12 = arith.truncf %10 : vector<1x16xf32> to vector<1x16xbf16>
    %cst_11 = arith.constant dense<0.000000e+00> : vector<1x48xf32>
    %13 = tpu.matmul %12, %8, %cst_11 {dimension_numbers = #tpu.dot_dimension_numbers<[1], [0], [0], [1], [0, 0, 1, 1], [], []>} : vector<1x16xbf16>, vector<16x48xbf16>, vector<1x48xf32> -> vector<1x48xf32>
    %14 = arith.addf %13, %9 : vector<1x48xf32>
    %15 = vector.extract_strided_slice %11 {offsets = [0, 0], sizes = [1, 16], strides = [1, 1]} : vector<1x48xf32> to vector<1x16xf32>
    %16 = vector.extract_strided_slice %14 {offsets = [0, 0], sizes = [1, 16], strides = [1, 1]} : vector<1x48xf32> to vector<1x16xf32>
    %17 = arith.addf %15, %16 : vector<1x16xf32>
    %18 = arith.negf %17 : vector<1x16xf32>
    %19 = math.exp %18 : vector<1x16xf32>
    %cst_12 = arith.constant 1.000000e+00 : f32
    %20 = vector.broadcast %cst_12 : f32 to vector<1x16xf32>
    %21 = arith.addf %20, %19 : vector<1x16xf32>
    %22 = arith.divf %20, %21 : vector<1x16xf32>
    %23 = vector.extract_strided_slice %11 {offsets = [0, 16], sizes = [1, 16], strides = [1, 1]} : vector<1x48xf32> to vector<1x16xf32>
    %24 = vector.extract_strided_slice %14 {offsets = [0, 16], sizes = [1, 16], strides = [1, 1]} : vector<1x48xf32> to vector<1x16xf32>
    %25 = arith.addf %23, %24 : vector<1x16xf32>
    %26 = arith.negf %25 : vector<1x16xf32>
    %27 = math.exp %26 : vector<1x16xf32>
    %cst_13 = arith.constant 1.000000e+00 : f32
    %28 = vector.broadcast %cst_13 : f32 to vector<1x16xf32>
    %29 = arith.addf %28, %27 : vector<1x16xf32>
    %30 = arith.divf %28, %29 : vector<1x16xf32>
    %31 = vector.extract_strided_slice %11 {offsets = [0, 32], sizes = [1, 16], strides = [1, 1]} : vector<1x48xf32> to vector<1x16xf32>
    %32 = vector.extract_strided_slice %14 {offsets = [0, 32], sizes = [1, 16], strides = [1, 1]} : vector<1x48xf32> to vector<1x16xf32>
    %33 = arith.mulf %22, %32 : vector<1x16xf32>
    %34 = arith.addf %31, %33 : vector<1x16xf32>
    %35 = math.tanh %34 : vector<1x16xf32>
    %cst_14 = arith.constant 1.000000e+00 : f32
    %36 = vector.broadcast %cst_14 : f32 to vector<1x16xf32>
    %37 = arith.subf %36, %30 : vector<1x16xf32>
    %38 = arith.mulf %37, %35 : vector<1x16xf32>
    %39 = arith.mulf %30, %10 : vector<1x16xf32>
    %40 = arith.addf %38, %39 : vector<1x16xf32>
    %41 = vector.extract_strided_slice %7 {offsets = [1, 0], sizes = [1, 48], strides = [1, 1]} : vector<8x48xf32> to vector<1x48xf32>
    %42 = arith.truncf %40 : vector<1x16xf32> to vector<1x16xbf16>
    %cst_15 = arith.constant dense<0.000000e+00> : vector<1x48xf32>
    %43 = tpu.matmul %42, %8, %cst_15 {dimension_numbers = #tpu.dot_dimension_numbers<[1], [0], [0], [1], [0, 0, 1, 1], [], []>} : vector<1x16xbf16>, vector<16x48xbf16>, vector<1x48xf32> -> vector<1x48xf32>
    %44 = arith.addf %43, %9 : vector<1x48xf32>
    %45 = vector.extract_strided_slice %41 {offsets = [0, 0], sizes = [1, 16], strides = [1, 1]} : vector<1x48xf32> to vector<1x16xf32>
    %46 = vector.extract_strided_slice %44 {offsets = [0, 0], sizes = [1, 16], strides = [1, 1]} : vector<1x48xf32> to vector<1x16xf32>
    %47 = arith.addf %45, %46 : vector<1x16xf32>
    %48 = arith.negf %47 : vector<1x16xf32>
    %49 = math.exp %48 : vector<1x16xf32>
    %cst_16 = arith.constant 1.000000e+00 : f32
    %50 = vector.broadcast %cst_16 : f32 to vector<1x16xf32>
    %51 = arith.addf %50, %49 : vector<1x16xf32>
    %52 = arith.divf %50, %51 : vector<1x16xf32>
    %53 = vector.extract_strided_slice %41 {offsets = [0, 16], sizes = [1, 16], strides = [1, 1]} : vector<1x48xf32> to vector<1x16xf32>
    %54 = vector.extract_strided_slice %44 {offsets = [0, 16], sizes = [1, 16], strides = [1, 1]} : vector<1x48xf32> to vector<1x16xf32>
    %55 = arith.addf %53, %54 : vector<1x16xf32>
    %56 = arith.negf %55 : vector<1x16xf32>
    %57 = math.exp %56 : vector<1x16xf32>
    %cst_17 = arith.constant 1.000000e+00 : f32
    %58 = vector.broadcast %cst_17 : f32 to vector<1x16xf32>
    %59 = arith.addf %58, %57 : vector<1x16xf32>
    %60 = arith.divf %58, %59 : vector<1x16xf32>
    %61 = vector.extract_strided_slice %41 {offsets = [0, 32], sizes = [1, 16], strides = [1, 1]} : vector<1x48xf32> to vector<1x16xf32>
    %62 = vector.extract_strided_slice %44 {offsets = [0, 32], sizes = [1, 16], strides = [1, 1]} : vector<1x48xf32> to vector<1x16xf32>
    %63 = arith.mulf %52, %62 : vector<1x16xf32>
    %64 = arith.addf %61, %63 : vector<1x16xf32>
    %65 = math.tanh %64 : vector<1x16xf32>
    %cst_18 = arith.constant 1.000000e+00 : f32
    %66 = vector.broadcast %cst_18 : f32 to vector<1x16xf32>
    %67 = arith.subf %66, %60 : vector<1x16xf32>
    %68 = arith.mulf %67, %65 : vector<1x16xf32>
    %69 = arith.mulf %60, %40 : vector<1x16xf32>
    %70 = arith.addf %68, %69 : vector<1x16xf32>
    %71 = vector.extract_strided_slice %7 {offsets = [2, 0], sizes = [1, 48], strides = [1, 1]} : vector<8x48xf32> to vector<1x48xf32>
    %72 = arith.truncf %70 : vector<1x16xf32> to vector<1x16xbf16>
    %cst_19 = arith.constant dense<0.000000e+00> : vector<1x48xf32>
    %73 = tpu.matmul %72, %8, %cst_19 {dimension_numbers = #tpu.dot_dimension_numbers<[1], [0], [0], [1], [0, 0, 1, 1], [], []>} : vector<1x16xbf16>, vector<16x48xbf16>, vector<1x48xf32> -> vector<1x48xf32>
    %74 = arith.addf %73, %9 : vector<1x48xf32>
    %75 = vector.extract_strided_slice %71 {offsets = [0, 0], sizes = [1, 16], strides = [1, 1]} : vector<1x48xf32> to vector<1x16xf32>
    %76 = vector.extract_strided_slice %74 {offsets = [0, 0], sizes = [1, 16], strides = [1, 1]} : vector<1x48xf32> to vector<1x16xf32>
    %77 = arith.addf %75, %76 : vector<1x16xf32>
    %78 = arith.negf %77 : vector<1x16xf32>
    %79 = math.exp %78 : vector<1x16xf32>
    %cst_20 = arith.constant 1.000000e+00 : f32
    %80 = vector.broadcast %cst_20 : f32 to vector<1x16xf32>
    %81 = arith.addf %80, %79 : vector<1x16xf32>
    %82 = arith.divf %80, %81 : vector<1x16xf32>
    %83 = vector.extract_strided_slice %71 {offsets = [0, 16], sizes = [1, 16], strides = [1, 1]} : vector<1x48xf32> to vector<1x16xf32>
    %84 = vector.extract_strided_slice %74 {offsets = [0, 16], sizes = [1, 16], strides = [1, 1]} : vector<1x48xf32> to vector<1x16xf32>
    %85 = arith.addf %83, %84 : vector<1x16xf32>
    %86 = arith.negf %85 : vector<1x16xf32>
    %87 = math.exp %86 : vector<1x16xf32>
    %cst_21 = arith.constant 1.000000e+00 : f32
    %88 = vector.broadcast %cst_21 : f32 to vector<1x16xf32>
    %89 = arith.addf %88, %87 : vector<1x16xf32>
    %90 = arith.divf %88, %89 : vector<1x16xf32>
    %91 = vector.extract_strided_slice %71 {offsets = [0, 32], sizes = [1, 16], strides = [1, 1]} : vector<1x48xf32> to vector<1x16xf32>
    %92 = vector.extract_strided_slice %74 {offsets = [0, 32], sizes = [1, 16], strides = [1, 1]} : vector<1x48xf32> to vector<1x16xf32>
    %93 = arith.mulf %82, %92 : vector<1x16xf32>
    %94 = arith.addf %91, %93 : vector<1x16xf32>
    %95 = math.tanh %94 : vector<1x16xf32>
    %cst_22 = arith.constant 1.000000e+00 : f32
    %96 = vector.broadcast %cst_22 : f32 to vector<1x16xf32>
    %97 = arith.subf %96, %90 : vector<1x16xf32>
    %98 = arith.mulf %97, %95 : vector<1x16xf32>
    %99 = arith.mulf %90, %70 : vector<1x16xf32>
    %100 = arith.addf %98, %99 : vector<1x16xf32>
    %101 = vector.extract_strided_slice %7 {offsets = [3, 0], sizes = [1, 48], strides = [1, 1]} : vector<8x48xf32> to vector<1x48xf32>
    %102 = arith.truncf %100 : vector<1x16xf32> to vector<1x16xbf16>
    %cst_23 = arith.constant dense<0.000000e+00> : vector<1x48xf32>
    %103 = tpu.matmul %102, %8, %cst_23 {dimension_numbers = #tpu.dot_dimension_numbers<[1], [0], [0], [1], [0, 0, 1, 1], [], []>} : vector<1x16xbf16>, vector<16x48xbf16>, vector<1x48xf32> -> vector<1x48xf32>
    %104 = arith.addf %103, %9 : vector<1x48xf32>
    %105 = vector.extract_strided_slice %101 {offsets = [0, 0], sizes = [1, 16], strides = [1, 1]} : vector<1x48xf32> to vector<1x16xf32>
    %106 = vector.extract_strided_slice %104 {offsets = [0, 0], sizes = [1, 16], strides = [1, 1]} : vector<1x48xf32> to vector<1x16xf32>
    %107 = arith.addf %105, %106 : vector<1x16xf32>
    %108 = arith.negf %107 : vector<1x16xf32>
    %109 = math.exp %108 : vector<1x16xf32>
    %cst_24 = arith.constant 1.000000e+00 : f32
    %110 = vector.broadcast %cst_24 : f32 to vector<1x16xf32>
    %111 = arith.addf %110, %109 : vector<1x16xf32>
    %112 = arith.divf %110, %111 : vector<1x16xf32>
    %113 = vector.extract_strided_slice %101 {offsets = [0, 16], sizes = [1, 16], strides = [1, 1]} : vector<1x48xf32> to vector<1x16xf32>
    %114 = vector.extract_strided_slice %104 {offsets = [0, 16], sizes = [1, 16], strides = [1, 1]} : vector<1x48xf32> to vector<1x16xf32>
    %115 = arith.addf %113, %114 : vector<1x16xf32>
    %116 = arith.negf %115 : vector<1x16xf32>
    %117 = math.exp %116 : vector<1x16xf32>
    %cst_25 = arith.constant 1.000000e+00 : f32
    %118 = vector.broadcast %cst_25 : f32 to vector<1x16xf32>
    %119 = arith.addf %118, %117 : vector<1x16xf32>
    %120 = arith.divf %118, %119 : vector<1x16xf32>
    %121 = vector.extract_strided_slice %101 {offsets = [0, 32], sizes = [1, 16], strides = [1, 1]} : vector<1x48xf32> to vector<1x16xf32>
    %122 = vector.extract_strided_slice %104 {offsets = [0, 32], sizes = [1, 16], strides = [1, 1]} : vector<1x48xf32> to vector<1x16xf32>
    %123 = arith.mulf %112, %122 : vector<1x16xf32>
    %124 = arith.addf %121, %123 : vector<1x16xf32>
    %125 = math.tanh %124 : vector<1x16xf32>
    %cst_26 = arith.constant 1.000000e+00 : f32
    %126 = vector.broadcast %cst_26 : f32 to vector<1x16xf32>
    %127 = arith.subf %126, %120 : vector<1x16xf32>
    %128 = arith.mulf %127, %125 : vector<1x16xf32>
    %129 = arith.mulf %120, %100 : vector<1x16xf32>
    %130 = arith.addf %128, %129 : vector<1x16xf32>
    %131 = vector.extract_strided_slice %7 {offsets = [4, 0], sizes = [1, 48], strides = [1, 1]} : vector<8x48xf32> to vector<1x48xf32>
    %132 = arith.truncf %130 : vector<1x16xf32> to vector<1x16xbf16>
    %cst_27 = arith.constant dense<0.000000e+00> : vector<1x48xf32>
    %133 = tpu.matmul %132, %8, %cst_27 {dimension_numbers = #tpu.dot_dimension_numbers<[1], [0], [0], [1], [0, 0, 1, 1], [], []>} : vector<1x16xbf16>, vector<16x48xbf16>, vector<1x48xf32> -> vector<1x48xf32>
    %134 = arith.addf %133, %9 : vector<1x48xf32>
    %135 = vector.extract_strided_slice %131 {offsets = [0, 0], sizes = [1, 16], strides = [1, 1]} : vector<1x48xf32> to vector<1x16xf32>
    %136 = vector.extract_strided_slice %134 {offsets = [0, 0], sizes = [1, 16], strides = [1, 1]} : vector<1x48xf32> to vector<1x16xf32>
    %137 = arith.addf %135, %136 : vector<1x16xf32>
    %138 = arith.negf %137 : vector<1x16xf32>
    %139 = math.exp %138 : vector<1x16xf32>
    %cst_28 = arith.constant 1.000000e+00 : f32
    %140 = vector.broadcast %cst_28 : f32 to vector<1x16xf32>
    %141 = arith.addf %140, %139 : vector<1x16xf32>
    %142 = arith.divf %140, %141 : vector<1x16xf32>
    %143 = vector.extract_strided_slice %131 {offsets = [0, 16], sizes = [1, 16], strides = [1, 1]} : vector<1x48xf32> to vector<1x16xf32>
    %144 = vector.extract_strided_slice %134 {offsets = [0, 16], sizes = [1, 16], strides = [1, 1]} : vector<1x48xf32> to vector<1x16xf32>
    %145 = arith.addf %143, %144 : vector<1x16xf32>
    %146 = arith.negf %145 : vector<1x16xf32>
    %147 = math.exp %146 : vector<1x16xf32>
    %cst_29 = arith.constant 1.000000e+00 : f32
    %148 = vector.broadcast %cst_29 : f32 to vector<1x16xf32>
    %149 = arith.addf %148, %147 : vector<1x16xf32>
    %150 = arith.divf %148, %149 : vector<1x16xf32>
    %151 = vector.extract_strided_slice %131 {offsets = [0, 32], sizes = [1, 16], strides = [1, 1]} : vector<1x48xf32> to vector<1x16xf32>
    %152 = vector.extract_strided_slice %134 {offsets = [0, 32], sizes = [1, 16], strides = [1, 1]} : vector<1x48xf32> to vector<1x16xf32>
    %153 = arith.mulf %142, %152 : vector<1x16xf32>
    %154 = arith.addf %151, %153 : vector<1x16xf32>
    %155 = math.tanh %154 : vector<1x16xf32>
    %cst_30 = arith.constant 1.000000e+00 : f32
    %156 = vector.broadcast %cst_30 : f32 to vector<1x16xf32>
    %157 = arith.subf %156, %150 : vector<1x16xf32>
    %158 = arith.mulf %157, %155 : vector<1x16xf32>
    %159 = arith.mulf %150, %130 : vector<1x16xf32>
    %160 = arith.addf %158, %159 : vector<1x16xf32>
    %161 = vector.extract_strided_slice %7 {offsets = [5, 0], sizes = [1, 48], strides = [1, 1]} : vector<8x48xf32> to vector<1x48xf32>
    %162 = arith.truncf %160 : vector<1x16xf32> to vector<1x16xbf16>
    %cst_31 = arith.constant dense<0.000000e+00> : vector<1x48xf32>
    %163 = tpu.matmul %162, %8, %cst_31 {dimension_numbers = #tpu.dot_dimension_numbers<[1], [0], [0], [1], [0, 0, 1, 1], [], []>} : vector<1x16xbf16>, vector<16x48xbf16>, vector<1x48xf32> -> vector<1x48xf32>
    %164 = arith.addf %163, %9 : vector<1x48xf32>
    %165 = vector.extract_strided_slice %161 {offsets = [0, 0], sizes = [1, 16], strides = [1, 1]} : vector<1x48xf32> to vector<1x16xf32>
    %166 = vector.extract_strided_slice %164 {offsets = [0, 0], sizes = [1, 16], strides = [1, 1]} : vector<1x48xf32> to vector<1x16xf32>
    %167 = arith.addf %165, %166 : vector<1x16xf32>
    %168 = arith.negf %167 : vector<1x16xf32>
    %169 = math.exp %168 : vector<1x16xf32>
    %cst_32 = arith.constant 1.000000e+00 : f32
    %170 = vector.broadcast %cst_32 : f32 to vector<1x16xf32>
    %171 = arith.addf %170, %169 : vector<1x16xf32>
    %172 = arith.divf %170, %171 : vector<1x16xf32>
    %173 = vector.extract_strided_slice %161 {offsets = [0, 16], sizes = [1, 16], strides = [1, 1]} : vector<1x48xf32> to vector<1x16xf32>
    %174 = vector.extract_strided_slice %164 {offsets = [0, 16], sizes = [1, 16], strides = [1, 1]} : vector<1x48xf32> to vector<1x16xf32>
    %175 = arith.addf %173, %174 : vector<1x16xf32>
    %176 = arith.negf %175 : vector<1x16xf32>
    %177 = math.exp %176 : vector<1x16xf32>
    %cst_33 = arith.constant 1.000000e+00 : f32
    %178 = vector.broadcast %cst_33 : f32 to vector<1x16xf32>
    %179 = arith.addf %178, %177 : vector<1x16xf32>
    %180 = arith.divf %178, %179 : vector<1x16xf32>
    %181 = vector.extract_strided_slice %161 {offsets = [0, 32], sizes = [1, 16], strides = [1, 1]} : vector<1x48xf32> to vector<1x16xf32>
    %182 = vector.extract_strided_slice %164 {offsets = [0, 32], sizes = [1, 16], strides = [1, 1]} : vector<1x48xf32> to vector<1x16xf32>
    %183 = arith.mulf %172, %182 : vector<1x16xf32>
    %184 = arith.addf %181, %183 : vector<1x16xf32>
    %185 = math.tanh %184 : vector<1x16xf32>
    %cst_34 = arith.constant 1.000000e+00 : f32
    %186 = vector.broadcast %cst_34 : f32 to vector<1x16xf32>
    %187 = arith.subf %186, %180 : vector<1x16xf32>
    %188 = arith.mulf %187, %185 : vector<1x16xf32>
    %189 = arith.mulf %180, %160 : vector<1x16xf32>
    %190 = arith.addf %188, %189 : vector<1x16xf32>
    %191 = vector.extract_strided_slice %7 {offsets = [6, 0], sizes = [1, 48], strides = [1, 1]} : vector<8x48xf32> to vector<1x48xf32>
    %192 = arith.truncf %190 : vector<1x16xf32> to vector<1x16xbf16>
    %cst_35 = arith.constant dense<0.000000e+00> : vector<1x48xf32>
    %193 = tpu.matmul %192, %8, %cst_35 {dimension_numbers = #tpu.dot_dimension_numbers<[1], [0], [0], [1], [0, 0, 1, 1], [], []>} : vector<1x16xbf16>, vector<16x48xbf16>, vector<1x48xf32> -> vector<1x48xf32>
    %194 = arith.addf %193, %9 : vector<1x48xf32>
    %195 = vector.extract_strided_slice %191 {offsets = [0, 0], sizes = [1, 16], strides = [1, 1]} : vector<1x48xf32> to vector<1x16xf32>
    %196 = vector.extract_strided_slice %194 {offsets = [0, 0], sizes = [1, 16], strides = [1, 1]} : vector<1x48xf32> to vector<1x16xf32>
    %197 = arith.addf %195, %196 : vector<1x16xf32>
    %198 = arith.negf %197 : vector<1x16xf32>
    %199 = math.exp %198 : vector<1x16xf32>
    %cst_36 = arith.constant 1.000000e+00 : f32
    %200 = vector.broadcast %cst_36 : f32 to vector<1x16xf32>
    %201 = arith.addf %200, %199 : vector<1x16xf32>
    %202 = arith.divf %200, %201 : vector<1x16xf32>
    %203 = vector.extract_strided_slice %191 {offsets = [0, 16], sizes = [1, 16], strides = [1, 1]} : vector<1x48xf32> to vector<1x16xf32>
    %204 = vector.extract_strided_slice %194 {offsets = [0, 16], sizes = [1, 16], strides = [1, 1]} : vector<1x48xf32> to vector<1x16xf32>
    %205 = arith.addf %203, %204 : vector<1x16xf32>
    %206 = arith.negf %205 : vector<1x16xf32>
    %207 = math.exp %206 : vector<1x16xf32>
    %cst_37 = arith.constant 1.000000e+00 : f32
    %208 = vector.broadcast %cst_37 : f32 to vector<1x16xf32>
    %209 = arith.addf %208, %207 : vector<1x16xf32>
    %210 = arith.divf %208, %209 : vector<1x16xf32>
    %211 = vector.extract_strided_slice %191 {offsets = [0, 32], sizes = [1, 16], strides = [1, 1]} : vector<1x48xf32> to vector<1x16xf32>
    %212 = vector.extract_strided_slice %194 {offsets = [0, 32], sizes = [1, 16], strides = [1, 1]} : vector<1x48xf32> to vector<1x16xf32>
    %213 = arith.mulf %202, %212 : vector<1x16xf32>
    %214 = arith.addf %211, %213 : vector<1x16xf32>
    %215 = math.tanh %214 : vector<1x16xf32>
    %cst_38 = arith.constant 1.000000e+00 : f32
    %216 = vector.broadcast %cst_38 : f32 to vector<1x16xf32>
    %217 = arith.subf %216, %210 : vector<1x16xf32>
    %218 = arith.mulf %217, %215 : vector<1x16xf32>
    %219 = arith.mulf %210, %190 : vector<1x16xf32>
    %220 = arith.addf %218, %219 : vector<1x16xf32>
    %221 = vector.extract_strided_slice %7 {offsets = [7, 0], sizes = [1, 48], strides = [1, 1]} : vector<8x48xf32> to vector<1x48xf32>
    %222 = arith.truncf %220 : vector<1x16xf32> to vector<1x16xbf16>
    %cst_39 = arith.constant dense<0.000000e+00> : vector<1x48xf32>
    %223 = tpu.matmul %222, %8, %cst_39 {dimension_numbers = #tpu.dot_dimension_numbers<[1], [0], [0], [1], [0, 0, 1, 1], [], []>} : vector<1x16xbf16>, vector<16x48xbf16>, vector<1x48xf32> -> vector<1x48xf32>
    %224 = arith.addf %223, %9 : vector<1x48xf32>
    %225 = vector.extract_strided_slice %221 {offsets = [0, 0], sizes = [1, 16], strides = [1, 1]} : vector<1x48xf32> to vector<1x16xf32>
    %226 = vector.extract_strided_slice %224 {offsets = [0, 0], sizes = [1, 16], strides = [1, 1]} : vector<1x48xf32> to vector<1x16xf32>
    %227 = arith.addf %225, %226 : vector<1x16xf32>
    %228 = arith.negf %227 : vector<1x16xf32>
    %229 = math.exp %228 : vector<1x16xf32>
    %cst_40 = arith.constant 1.000000e+00 : f32
    %230 = vector.broadcast %cst_40 : f32 to vector<1x16xf32>
    %231 = arith.addf %230, %229 : vector<1x16xf32>
    %232 = arith.divf %230, %231 : vector<1x16xf32>
    %233 = vector.extract_strided_slice %221 {offsets = [0, 16], sizes = [1, 16], strides = [1, 1]} : vector<1x48xf32> to vector<1x16xf32>
    %234 = vector.extract_strided_slice %224 {offsets = [0, 16], sizes = [1, 16], strides = [1, 1]} : vector<1x48xf32> to vector<1x16xf32>
    %235 = arith.addf %233, %234 : vector<1x16xf32>
    %236 = arith.negf %235 : vector<1x16xf32>
    %237 = math.exp %236 : vector<1x16xf32>
    %cst_41 = arith.constant 1.000000e+00 : f32
    %238 = vector.broadcast %cst_41 : f32 to vector<1x16xf32>
    %239 = arith.addf %238, %237 : vector<1x16xf32>
    %240 = arith.divf %238, %239 : vector<1x16xf32>
    %241 = vector.extract_strided_slice %221 {offsets = [0, 32], sizes = [1, 16], strides = [1, 1]} : vector<1x48xf32> to vector<1x16xf32>
    %242 = vector.extract_strided_slice %224 {offsets = [0, 32], sizes = [1, 16], strides = [1, 1]} : vector<1x48xf32> to vector<1x16xf32>
    %243 = arith.mulf %232, %242 : vector<1x16xf32>
    %244 = arith.addf %241, %243 : vector<1x16xf32>
    %245 = math.tanh %244 : vector<1x16xf32>
    %cst_42 = arith.constant 1.000000e+00 : f32
    %246 = vector.broadcast %cst_42 : f32 to vector<1x16xf32>
    %247 = arith.subf %246, %240 : vector<1x16xf32>
    %248 = arith.mulf %247, %245 : vector<1x16xf32>
    %249 = arith.mulf %240, %220 : vector<1x16xf32>
    %250 = arith.addf %248, %249 : vector<1x16xf32>
    %251 = vector.extract_strided_slice %1 {offsets = [7, 0], sizes = [1, 32], strides = [1, 1]} : vector<8x32xf32> to vector<1x32xf32>
    %252 = arith.truncf %251 : vector<1x32xf32> to vector<1x32xbf16>
    %c0_43 = arith.constant 0 : index
    %c0_44 = arith.constant 0 : index
    %253 = vector.load %arg6[%c0_43, %c0_44] : memref<32x48xbf16, #tpu.memory_space<vmem>>, vector<32x48xbf16>
    %cst_45 = arith.constant dense<0.000000e+00> : vector<1x48xf32>
    %254 = tpu.matmul %252, %253, %cst_45 {dimension_numbers = #tpu.dot_dimension_numbers<[1], [0], [0], [1], [0, 0, 1, 1], [], []>} : vector<1x32xbf16>, vector<32x48xbf16>, vector<1x48xf32> -> vector<1x48xf32>
    %c0_46 = arith.constant 0 : index
    %c0_47 = arith.constant 0 : index
    %255 = vector.load %arg7[%c0_46, %c0_47] : memref<1x48xf32, #tpu.memory_space<vmem>>, vector<1x48xf32>
    %256 = arith.addf %254, %255 : vector<1x48xf32>
    %c0_48 = arith.constant 0 : index
    %c0_49 = arith.constant 0 : index
    %257 = vector.load %arg8[%c0_48, %c0_49] : memref<1x48xf32, #tpu.memory_space<vmem>>, vector<1x48xf32>
    %cst_50 = arith.constant 0.000000e+00 : f32
    %258 = vector.broadcast %cst_50 : f32 to vector<1x16xf32>
    %259 = vector.extract_strided_slice %256 {offsets = [0, 0], sizes = [1, 16], strides = [1, 1]} : vector<1x48xf32> to vector<1x16xf32>
    %260 = vector.extract_strided_slice %257 {offsets = [0, 0], sizes = [1, 16], strides = [1, 1]} : vector<1x48xf32> to vector<1x16xf32>
    %261 = arith.addf %259, %260 : vector<1x16xf32>
    %262 = arith.negf %261 : vector<1x16xf32>
    %263 = math.exp %262 : vector<1x16xf32>
    %cst_51 = arith.constant 1.000000e+00 : f32
    %264 = vector.broadcast %cst_51 : f32 to vector<1x16xf32>
    %265 = arith.addf %264, %263 : vector<1x16xf32>
    %266 = arith.divf %264, %265 : vector<1x16xf32>
    %267 = vector.extract_strided_slice %256 {offsets = [0, 16], sizes = [1, 16], strides = [1, 1]} : vector<1x48xf32> to vector<1x16xf32>
    %268 = vector.extract_strided_slice %257 {offsets = [0, 16], sizes = [1, 16], strides = [1, 1]} : vector<1x48xf32> to vector<1x16xf32>
    %269 = arith.addf %267, %268 : vector<1x16xf32>
    %270 = arith.negf %269 : vector<1x16xf32>
    %271 = math.exp %270 : vector<1x16xf32>
    %cst_52 = arith.constant 1.000000e+00 : f32
    %272 = vector.broadcast %cst_52 : f32 to vector<1x16xf32>
    %273 = arith.addf %272, %271 : vector<1x16xf32>
    %274 = arith.divf %272, %273 : vector<1x16xf32>
    %275 = vector.extract_strided_slice %256 {offsets = [0, 32], sizes = [1, 16], strides = [1, 1]} : vector<1x48xf32> to vector<1x16xf32>
    %276 = vector.extract_strided_slice %257 {offsets = [0, 32], sizes = [1, 16], strides = [1, 1]} : vector<1x48xf32> to vector<1x16xf32>
    %277 = arith.mulf %266, %276 : vector<1x16xf32>
    %278 = arith.addf %275, %277 : vector<1x16xf32>
    %279 = math.tanh %278 : vector<1x16xf32>
    %cst_53 = arith.constant 1.000000e+00 : f32
    %280 = vector.broadcast %cst_53 : f32 to vector<1x16xf32>
    %281 = arith.subf %280, %274 : vector<1x16xf32>
    %282 = arith.mulf %281, %279 : vector<1x16xf32>
    %283 = arith.mulf %274, %258 : vector<1x16xf32>
    %284 = arith.addf %282, %283 : vector<1x16xf32>
    %285 = vector.extract_strided_slice %1 {offsets = [1, 0], sizes = [7, 32], strides = [1, 1]} : vector<8x32xf32> to vector<7x32xf32>
    %cst_54 = arith.constant 0.000000e+00 : f32
    %286 = vector.broadcast %cst_54 : f32 to vector<1x32xf32>
    %287 = tpu.concatenate %285, %286 in 0 : vector<7x32xf32>, vector<1x32xf32> -> vector<8x32xf32>
    %288 = vector.extract_strided_slice %1 {offsets = [2, 0], sizes = [6, 32], strides = [1, 1]} : vector<8x32xf32> to vector<6x32xf32>
    %cst_55 = arith.constant 0.000000e+00 : f32
    %289 = vector.broadcast %cst_55 : f32 to vector<2x32xf32>
    %290 = tpu.concatenate %288, %289 in 0 : vector<6x32xf32>, vector<2x32xf32> -> vector<8x32xf32>
    %291 = vector.extract_strided_slice %1 {offsets = [3, 0], sizes = [5, 32], strides = [1, 1]} : vector<8x32xf32> to vector<5x32xf32>
    %cst_56 = arith.constant 0.000000e+00 : f32
    %292 = vector.broadcast %cst_56 : f32 to vector<3x32xf32>
    %293 = tpu.concatenate %291, %292 in 0 : vector<5x32xf32>, vector<3x32xf32> -> vector<8x32xf32>
    %294 = vector.extract_strided_slice %1 {offsets = [4, 0], sizes = [4, 32], strides = [1, 1]} : vector<8x32xf32> to vector<4x32xf32>
    %cst_57 = arith.constant 0.000000e+00 : f32
    %295 = vector.broadcast %cst_57 : f32 to vector<4x32xf32>
    %296 = tpu.concatenate %294, %295 in 0 : vector<4x32xf32>, vector<4x32xf32> -> vector<8x32xf32>
    %297 = tpu.concatenate %1, %287, %290, %293, %296 in 1 : vector<8x32xf32>, vector<8x32xf32>, vector<8x32xf32>, vector<8x32xf32>, vector<8x32xf32> -> vector<8x160xf32>
    %298 = arith.truncf %297 : vector<8x160xf32> to vector<8x160xbf16>
    %c0_58 = arith.constant 0 : index
    %c0_59 = arith.constant 0 : index
    %299 = vector.load %arg9[%c0_58, %c0_59] : memref<160x24xbf16, #tpu.memory_space<vmem>>, vector<160x24xbf16>
    %cst_60 = arith.constant dense<0.000000e+00> : vector<8x24xf32>
    %300 = tpu.matmul %298, %299, %cst_60 {dimension_numbers = #tpu.dot_dimension_numbers<[1], [0], [0], [1], [0, 0, 1, 1], [], []>} : vector<8x160xbf16>, vector<160x24xbf16>, vector<8x24xf32> -> vector<8x24xf32>
    %c0_61 = arith.constant 0 : index
    %c0_62 = arith.constant 0 : index
    %301 = vector.load %arg10[%c0_61, %c0_62] : memref<1x24xf32, #tpu.memory_space<vmem>>, vector<1x24xf32>
    %302 = vector.broadcast %301 : vector<1x24xf32> to vector<8x24xf32>
    %303 = arith.addf %300, %302 : vector<8x24xf32>
    %cst_63 = arith.constant 0.000000e+00 : f32
    %304 = vector.broadcast %cst_63 : f32 to vector<8x24xf32>
    %305 = arith.maximumf %303, %304 : vector<8x24xf32>
    %c0_64 = arith.constant 0 : index
    %c0_65 = arith.constant 0 : index
    %306 = vector.load %arg11[%c0_64, %c0_65] : memref<8x24xf32, #tpu.memory_space<vmem>>, vector<8x24xf32>
    %307 = arith.mulf %305, %306 : vector<8x24xf32>
    %cst_66 = arith.constant dense<0xFF800000> : vector<24xf32>
    %308 = vector.multi_reduction <maximumf>, %307, %cst_66 [0] : vector<8x24xf32> to vector<24xf32>
    %309 = vector.shape_cast %308 : vector<24xf32> to vector<1x24xf32>
    %c0_67 = arith.constant 0 : index
    %c0_68 = arith.constant 0 : index
    %310 = vector.load %arg12[%c0_67, %c0_68] : memref<56x2xbf16, #tpu.memory_space<vmem>>, vector<56x2xbf16>
    %311 = arith.truncf %250 : vector<1x16xf32> to vector<1x16xbf16>
    %312 = vector.extract_strided_slice %310 {offsets = [0, 0], sizes = [16, 2], strides = [1, 1]} : vector<56x2xbf16> to vector<16x2xbf16>
    %cst_69 = arith.constant dense<0.000000e+00> : vector<1x2xf32>
    %313 = tpu.matmul %311, %312, %cst_69 {dimension_numbers = #tpu.dot_dimension_numbers<[1], [0], [0], [1], [0, 0, 1, 1], [], []>} : vector<1x16xbf16>, vector<16x2xbf16>, vector<1x2xf32> -> vector<1x2xf32>
    %314 = arith.truncf %284 : vector<1x16xf32> to vector<1x16xbf16>
    %315 = vector.extract_strided_slice %310 {offsets = [16, 0], sizes = [16, 2], strides = [1, 1]} : vector<56x2xbf16> to vector<16x2xbf16>
    %cst_70 = arith.constant dense<0.000000e+00> : vector<1x2xf32>
    %316 = tpu.matmul %314, %315, %cst_70 {dimension_numbers = #tpu.dot_dimension_numbers<[1], [0], [0], [1], [0, 0, 1, 1], [], []>} : vector<1x16xbf16>, vector<16x2xbf16>, vector<1x2xf32> -> vector<1x2xf32>
    %317 = arith.addf %313, %316 : vector<1x2xf32>
    %318 = arith.truncf %309 : vector<1x24xf32> to vector<1x24xbf16>
    %319 = vector.extract_strided_slice %310 {offsets = [32, 0], sizes = [24, 2], strides = [1, 1]} : vector<56x2xbf16> to vector<24x2xbf16>
    %cst_71 = arith.constant dense<0.000000e+00> : vector<1x2xf32>
    %320 = tpu.matmul %318, %319, %cst_71 {dimension_numbers = #tpu.dot_dimension_numbers<[1], [0], [0], [1], [0, 0, 1, 1], [], []>} : vector<1x24xbf16>, vector<24x2xbf16>, vector<1x2xf32> -> vector<1x2xf32>
    %321 = arith.addf %317, %320 : vector<1x2xf32>
    %c0_72 = arith.constant 0 : index
    %c0_73 = arith.constant 0 : index
    %322 = vector.load %arg13[%c0_72, %c0_73] : memref<1x2xf32, #tpu.memory_space<vmem>>, vector<1x2xf32>
    %323 = arith.addf %321, %322 : vector<1x2xf32>
    %324 = vector.shape_cast %323 : vector<1x2xf32> to vector<1x1x2xf32>
    %c0_74 = arith.constant 0 : index
    %c0_75 = arith.constant 0 : index
    %c0_76 = arith.constant 0 : index
    %325 = vector.load %arg14[%c0_74, %c0_75, %c0_76] : memref<1x1x2xf32, #tpu.memory_space<vmem>>, vector<1x1x2xf32>
    tpu.vector_store %arg14[%c0_74, %c0_75, %c0_76], %324 {strides = array<i32>} : memref<1x1x2xf32, #tpu.memory_space<vmem>>, vector<1x1x2xf32>,
    return
  }
  func.func @transform_0(%arg0: i32) -> (i32, i32, i32) {
    %c0_i32 = arith.constant 0 : i32
    %c0_i32_0 = arith.constant 0 : i32
    %c0_i32_1 = arith.constant 0 : i32
    return %arg0, %c0_i32, %c0_i32_0 : i32, i32, i32
  }
  func.func @transform_1(%arg0: i32) -> (i32, i32) {
    %c0_i32 = arith.constant 0 : i32
    %c0_i32_0 = arith.constant 0 : i32
    %c0_i32_1 = arith.constant 0 : i32
    return %c0_i32, %c0_i32_0 : i32, i32
  }
  func.func @transform_2(%arg0: i32) -> (i32, i32) {
    %c0_i32 = arith.constant 0 : i32
    %c0_i32_0 = arith.constant 0 : i32
    %c0_i32_1 = arith.constant 0 : i32
    return %c0_i32, %c0_i32_0 : i32, i32
  }
  func.func @transform_3(%arg0: i32) -> (i32, i32) {
    %c0_i32 = arith.constant 0 : i32
    %c0_i32_0 = arith.constant 0 : i32
    %c0_i32_1 = arith.constant 0 : i32
    return %c0_i32, %c0_i32_0 : i32, i32
  }
  func.func @transform_4(%arg0: i32) -> (i32, i32) {
    %c0_i32 = arith.constant 0 : i32
    %c0_i32_0 = arith.constant 0 : i32
    %c0_i32_1 = arith.constant 0 : i32
    return %c0_i32, %c0_i32_0 : i32, i32
  }
  func.func @transform_5(%arg0: i32) -> (i32, i32) {
    %c0_i32 = arith.constant 0 : i32
    %c0_i32_0 = arith.constant 0 : i32
    %c0_i32_1 = arith.constant 0 : i32
    return %c0_i32, %c0_i32_0 : i32, i32
  }
  func.func @transform_6(%arg0: i32) -> (i32, i32) {
    %c0_i32 = arith.constant 0 : i32
    %c0_i32_0 = arith.constant 0 : i32
    %c0_i32_1 = arith.constant 0 : i32
    return %c0_i32, %c0_i32_0 : i32, i32
  }
  func.func @transform_7(%arg0: i32) -> (i32, i32) {
    %c0_i32 = arith.constant 0 : i32
    %c0_i32_0 = arith.constant 0 : i32
    %c0_i32_1 = arith.constant 0 : i32
    return %c0_i32, %c0_i32_0 : i32, i32
  }
  func.func @transform_8(%arg0: i32) -> (i32, i32) {
    %c0_i32 = arith.constant 0 : i32
    %c0_i32_0 = arith.constant 0 : i32
    %c0_i32_1 = arith.constant 0 : i32
    return %c0_i32, %c0_i32_0 : i32, i32
  }
  func.func @transform_9(%arg0: i32) -> (i32, i32) {
    %c0_i32 = arith.constant 0 : i32
    %c0_i32_0 = arith.constant 0 : i32
    %c0_i32_1 = arith.constant 0 : i32
    return %c0_i32, %c0_i32_0 : i32, i32
  }
  func.func @transform_10(%arg0: i32) -> (i32, i32) {
    %c0_i32 = arith.constant 0 : i32
    %c0_i32_0 = arith.constant 0 : i32
    %c0_i32_1 = arith.constant 0 : i32
    return %c0_i32, %c0_i32_0 : i32, i32
  }
  func.func @transform_11(%arg0: i32) -> (i32, i32) {
    %c0_i32 = arith.constant 0 : i32
    %c0_i32_0 = arith.constant 0 : i32
    %c0_i32_1 = arith.constant 0 : i32
    return %c0_i32, %c0_i32_0 : i32, i32
  }
  func.func @transform_12(%arg0: i32) -> (i32, i32) {
    %c0_i32 = arith.constant 0 : i32
    %c0_i32_0 = arith.constant 0 : i32
    %c0_i32_1 = arith.constant 0 : i32
    return %c0_i32, %c0_i32_0 : i32, i32
  }
  func.func @transform_13(%arg0: i32) -> (i32, i32, i32) {
    %c0_i32 = arith.constant 0 : i32
    %c0_i32_0 = arith.constant 0 : i32
    %c0_i32_1 = arith.constant 0 : i32
    return %arg0, %c0_i32, %c0_i32_0 : i32, i32, i32
  }
}

</mosaic_0001>

<bundles_post_ra>
// kernel: tpu_custom_call.1
= control target key start
LH: loop header
LB: loop body
LE: loop exit
PB: predicated region body
PF: predicated region fallthrough
CT: control target
= control target key end

     0   :  { %s2035_s0 = inlined_call_operand.vmem [shape: f32[2,8,32], index: 0, kind: input, shape index: {}]   ;;  %s2036_s1 = inlined_call_operand.vmem [shape: bf16[32,48], index: 1, kind: input, shape index: {}]   ;;  %s2037_s2 = inlined_call_operand.vmem [shape: bf16[16,48], index: 2, kind: input, shape index: {}]   ;;  %s2038_s3 = inlined_call_operand.vmem [shape: f32[1,48], index: 3, kind: input, shape index: {}]   ;;  %s2039_s4 = inlined_call_operand.vmem [shape: f32[1,48], index: 4, kind: input, shape index: {}]   ;;  %s2040_s5 = inlined_call_operand.vmem [shape: bf16[32,48], index: 5, kind: input, shape index: {}]   ;;  %s2041_s6 = inlined_call_operand.vmem [shape: f32[1,48], index: 6, kind: input, shape index: {}]   ;;  %s2042_s7 = inlined_call_operand.vmem [shape: f32[1,48], index: 7, kind: input, shape index: {}]   ;;  %s2043_s8 = inlined_call_operand.vmem [shape: bf16[160,24], index: 8, kind: input, shape index: {}]   ;;  %s2044_s9 = inlined_call_operand.vmem [shape: f32[1,24], index: 9, kind: input, shape index: {}]   ;;  %s2045_s10 = inlined_call_operand.vmem [shape: f32[8,24], index: 10, kind: input, shape index: {}]   ;;  %s2046_s11 = inlined_call_operand.vmem [shape: bf16[56,2], index: 11, kind: input, shape index: {}]   ;;  %s2047_s12 = inlined_call_operand.vmem [shape: f32[1,2], index: 12, kind: input, shape index: {}]   ;;  %s2048_s13 = inlined_call_operand.hbm [shape: f32[2,1,2], index: 13, kind: output, shape index: {}]  }
   0x1   :  { %2054 = sst [smem:[#allocation5_spill]] %s2035_s0 }
   0x2   :  { %2055 = sst [smem:[#allocation6_spill]] %s2036_s1 }
   0x3   :  { %2056 = sst [smem:[#allocation7_spill]] %s2037_s2 }
   0x4   :  { %18 = vsyncpa [#allocation3], 0 }
   0x5   :  { %20 = vsyncpa [#allocation3 + $0x1], 0  ;;  %s1759_s25 = smov 0   ;;  %s1761_s26 = smov 0  }
   0x6   :  { %s1763_s27 = smov 0   ;;  %s1765_s28 = smov 0  }
   0x7 LB: > { %s1780_s29 = sadd.s32 4294967295, %s1682_s28   ;;  %s1400_s30 = sadd.s32 4294967294, %s1682_s28   ;;  %s1682_s28 = sphi %s1765_s28, %s2068_s28   ;;  %s1678_s27 = sphi %s1763_s27, %s2067_s27   ;;  %s1674_s26 = sphi %s1761_s26, %s2066_s26   ;;  %s1670_s25 = sphi %s1759_s25, %s2065_s25  }
   0x8   : > { %s1784_s14 = sadd.s32 1, %s1682_s28   ;;  %s311_s15 = sadd.s32 1, %s1678_s27 }
   0x9   : > { %s308_s16 = ssub.s32 %s1682_s28, %s1784_s14  ;;  %p321_p0 = scmp.ne.s32.totalorder %s1678_s27, %s1674_s26 }
   0xa   : > { %p309_p1 = scmp.eq.s32.totalorder %s308_s16, 0  ;;  %p322_p2 = scmp.eq.s32.totalorder %s1780_s29, 1 }
   0xb   : > { %p327_p3 = scmp.ne.s32.totalorder %s1674_s26, %s1670_s25  ;;  %p328_p4 = scmp.eq.s32.totalorder %s1400_s30, 1 }
   0xc   : > { %s1795_s17 = scalar_select %p309_p1, %s1678_s27, %s311_s15  }
   0xd   : > { %p1797_p5 = por %p322_p2, %p321_p0  ;;  %p1801_p6 = por %p328_p4, %p327_p3 }
   0xe   : > { %p1403_p7 = scmp.ge.s32.totalorder %s1682_s28, 1  ;;  %p389_p8 = scmp.lt.s32.totalorder %s1682_s28, 3 }
  0x10   : > { %p390_p9 = pnand %p1403_p7, %p389_p8 }
  0x11   : > { %s2059_s1 = sld [smem:[#allocation6_spill]] (!%p390_p9)  ;;  %p431_p10 = scmp.lt.s32.totalorder (!%p390_p9), %s1780_s29, 1 }
  0x12   : > { %393 = sbr.rel (%p390_p9) target bundleno = 4828 (0x12dc), region = 72  ;;  %s2060_s2 = sld [smem:[#allocation7_spill]] (!%p390_p9) }
  0x13   : > { %s2061_s0 = sld [smem:[#allocation5_spill]] (!%p390_p9)  ;;  %s2053_s30 = smov (!%p390_p9), 96  }
  0x14   : > { %s2051_s20 = smov (!%p390_p9), 32   ;;  %s2049_s21 = smov (!%p390_p9), 112  }
  0x15   : > { %s1640_s24 = scalar_lea.hbm (!%p390_p9), %s2048_s13, 2 }
  0x17   : > { %v1502_v0 = vld [vmem:[%s2059_s1 + $0x8] sm:$0xff]  ;;  %v1501_v2 = vld [vmem:[%s2059_s1] sm:$0xff]  ;;  %s432_s15 = scalar_select %p431_p10, %s1780_s29, 1  ;;  %v1684_v3 = vmov 0   ;;  %vm458_vm0 = vcmask 261120   ;;  %vm484_vm5 = vcmask 130048  }
  0x18   : > { %v1503_v1 = vld [vmem:[%s2060_s2] sm:$0xff]  ;;  %468 = vmatpush.bf16.msra.mxu0 %v1502_v0 }
  0x19   : > { %495 = vmatpush.bf16.msra.mxu1 %v1503_v1  ;;  %554 = vmatpush.bf16.msra.mxu2 %v1503_v1  ;;  %s1404_s16 = sshll.u32 %s432_s15, 3  ;;  %v1832_v6 = vld [vmem:[%s2039_s4] sm:$0x1] }
  0x1a   : > { %620 = vmatpush.bf16.msra.mxu3 %v1503_v1  ;;  %s434_s22 = scalar_lea.vmem %s2061_s0, %s1404_s16  ;;  %v1563_v12 = vld [vmem:[%s2038_s3] ss:$0 sm:$0xff]  ;;  %s1688_s16 = smov 64  }
  0x1b   : > { %v1821_v4 = vld [vmem:[%s434_s22] sm:$0xff] }
  0x1c   : > { %496 = vmatmul.bf16.vlgmr.msra.gmra.mxu1 %v1684_v3  ;;  %469 = vmatpush.bf16.msra.mxu0 %v1501_v2  ;;  %v1825_v5 = vpack.c.bf16 %v1821_v4, %v1821_v4 }
  0x1d   : > { %685 = vmatpush.bf16.msrb.mxu1 %v1503_v1  ;;  %752 = vmatpush.bf16.msrb.mxu2 %v1503_v1 }
  0x1e   : > { %817 = vmatpush.bf16.msrb.mxu3 %v1503_v1 }
  0x1f   : > { %1413 = vmatmul.msk.bf16.vlgmr.msra.gmra.mxu0 %vm458_vm0, %v1825_v5 }
  0x20   : > { %884 = vmatpush.bf16.msrb.mxu0 %v1503_v1 }
  0x21   : > { %949 = vmatpush.bf16.msra.mxu1 %v1503_v1 }
  0x99   : > { %v497_v7 = vpop.f32.mrf.mxu1 }
  0x9a   : > { %v498_v8 = vadd.f32 %v497_v7, %v1832_v6 }
  0x9c   : > { %522 = vrot.lane.b32.xlu0 %v498_v8, %s2053_s30  ;;  %v471_v9 = vpop.f32.mrf.mxu0 }
  0x9d   : > { %v1839_v13 = vadd.f32 %v1563_v12, %v471_v9 }
  0x9f   : > { %v501_v14 = vadd.f32 %v498_v8, %v1839_v13 }
  0xa1   : > { %v499_v10 = vpop.f32.mrf.mxu1  ;;  %v1418_v15 = vmul.f32 -1.442695, %v501_v14 }
  0xa3   : > { %1566 = vpow2.f32 %v1418_v15 }
  0xa4   : > { %v473_v11 = vpop.f32.mrf.mxu0 }
  0xa9   : > { %v1567_v16 = vpop.eup %1566 }
  0xaa   : > { %v505_v17 = vadd.f32 1.0, %v1567_v16 }
  0xac   : > { %1568 = vrcp.f32 %v505_v17  ;;  %v517_v23 = vand.u32 2147483648, %v505_v17  ;;  %vm511_vm2 = vweird.f32 %v505_v17  ;;  %v515_v24 = vand.u32 2147483647, %v505_v17 }
  0xae   : > { %v518_v26 = vor.u32 1.1754944e-38, %v517_v23  ;;  %vm516_vm4 = vcmp.eq.f32.partialorder %v515_v24, 8.507059e+37 }
  0xb2   : > { %v1569_v18 = vpop.eup %1568 }
  0xb3   : > { %v507_v19 = vmul.f32 %v1569_v18, %v505_v17  ;;  %vm512_vm1 = vweird.f32 %v1569_v18 }
  0xb4   : > { %vm513_vm3 = vmor %vm511_vm2, %vm512_vm1 }
  0xb5   : > { %v508_v20 = vsub.f32 1.0, %v507_v19 }
  0xb7   : > { %v509_v21 = vmul.f32 %v1569_v18, %v508_v20 }
  0xb9   : > { %v510_v22 = vadd.f32 %v1569_v18, %v509_v21 }
  0xbb   : > { %v514_v25 = vsel %vm513_vm3, %v1569_v18, %v510_v22 }
  0xbc   : > { %v519_v28 = vsel %vm516_vm4, %v518_v26, %v514_v25 }
  0xbd   : > { %v532_v33 = vsub.f32 1.0, %v519_v28  ;;  %v538_v35 = vmul.f32 0.0, %v519_v28 }
 0x10e   : > { %v523_v27 = vpop.permute.xlu0 %522 }
 0x10f   : > { %v525_v29 = vmul.f32 %v523_v27, %v519_v28 }
 0x111   : > { %527 = vrot.lane.b32.xlu0 %v525_v29, %s2051_s20 }
 0x183   : > { %v528_v30 = vpop.permute.xlu0 %527 }
 0x184   : > { %v530_v31 = vadd.f32 %v528_v30, %v1839_v13 }
 0x186   : > { %1570 = vtanh.f32 %v530_v31 }
 0x18c   : > { %v1571_v32 = vpop.eup %1570 }
 0x18d   : > { %534 = vrot.lane.b32.xlu1 %v1571_v32, %s2049_s21 }
 0x1ff   : > { %v535_v34 = vpop.permute.xlu1 %534 }
 0x200   : > { %v537_v36 = vmul.f32 %v535_v34, %v532_v33 }
 0x202   : > { %v539_v37 = vadd.f32 %v538_v35, %v537_v36 }
 0x204   : > { %v540_v38 = vpack.c.bf16 %v539_v37, %v539_v37  ;;  %v600_v56 = vrot.slane %v539_v37, 7 }
 0x206   : > { %542 = vrot.lane.b32.xlu1 %v540_v38, %s2049_s21 }
 0x278   : > { %v543_v39 = vpop.permute.xlu1 %542 }
 0x279   : > { %1419 = vmatmul.msk.bf16.vlgmr.msra.gmra.mxu2 %vm484_vm5, %v543_v39 }
 0x2fc   : > { %v556_v40 = vpop.f32.mrf.mxu2 }
 0x2fd   : > { %v557_v41 = vadd.f32 %v556_v40, %v1832_v6 }
 0x2ff   : > { %v561_v42 = vrot.slane %v557_v41, 7 }
 0x301   : > { %v563_v43 = vadd.f32 %v561_v42, %v1839_v13  ;;  %583 = vrot.lane.b32.xlu2 %v561_v42, %s2053_s30 }
 0x303   : > { %v1420_v44 = vmul.f32 -1.442695, %v563_v43 }
 0x304   : > { %v558_v45 = vpop.f32.mrf.mxu2 }
 0x305   : > { %1572 = vpow2.f32 %v1420_v44 }
 0x30b   : > { %v1573_v46 = vpop.eup %1572 }
 0x30c   : > { %v567_v47 = vadd.f32 1.0, %v1573_v46 }
 0x30e   : > { %1574 = vrcp.f32 %v567_v47  ;;  %v579_v51 = vand.u32 2147483648, %v567_v47  ;;  %v577_v53 = vand.u32 2147483647, %v567_v47  ;;  %vm573_vm7 = vweird.f32 %v567_v47 }
 0x310   : > { %v580_v55 = vor.u32 1.1754944e-38, %v579_v51  ;;  %vm578_vm9 = vcmp.eq.f32.partialorder %v577_v53, 8.507059e+37 }
 0x314   : > { %v1575_v48 = vpop.eup %1574 }
 0x315   : > { %v569_v49 = vmul.f32 %v1575_v48, %v567_v47  ;;  %vm574_vm6 = vweird.f32 %v1575_v48 }
 0x316   : > { %vm575_vm8 = vmor %vm573_vm7, %vm574_vm6 }
 0x317   : > { %v570_v50 = vsub.f32 1.0, %v569_v49 }
 0x319   : > { %v571_v52 = vmul.f32 %v1575_v48, %v570_v50 }
 0x31b   : > { %v572_v54 = vadd.f32 %v1575_v48, %v571_v52 }
 0x31d   : > { %v576_v57 = vsel %vm575_vm8, %v1575_v48, %v572_v54 }
 0x31e   : > { %v581_v58 = vsel %vm578_vm9, %v580_v55, %v576_v57 }
 0x31f   : > { %v602_v59 = vmul.f32 %v600_v56, %v581_v58  ;;  %v593_v1 = vsub.f32 1.0, %v581_v58 }
 0x35b   : > { %v584_v60 = vpop.permute.xlu2 %583 }
 0x35c   : > { %v586_v61 = vmul.f32 %v584_v60, %v581_v58 }
 0x35e   : > { %588 = vrot.lane.b32.xlu2 %v586_v61, %s2051_s20 }
 0x3b8   : > { %v589_v62 = vpop.permute.xlu2 %588 }
 0x3b9   : > { %v591_v63 = vadd.f32 %v589_v62, %v1839_v13 }
 0x3bb   : > { %1576 = vtanh.f32 %v591_v63 }
 0x3c1   : > { %v1577_v0 = vpop.eup %1576 }
 0x3c2   : > { %595 = vrot.lane.b32.xlu0 %v1577_v0, %s2049_s21 }
 0x434   : > { %v596_v2 = vpop.permute.xlu0 %595 }
 0x435   : > { %v598_v3 = vmul.f32 %v596_v2, %v593_v1 }
 0x437   : > { %v603_v7 = vadd.f32 %v602_v59, %v598_v3 }
 0x439   : > { %v604_v8 = vpack.c.bf16 %v603_v7, %v603_v7  ;;  %v666_v28 = vrot.slane %v603_v7, 7 }
 0x43b   : > { %v606_v9 = vshrl.u32 %v604_v8, 16 }
 0x43d   : > { %608 = vrot.lane.b32.xlu1 %v606_v9, %s2049_s21 }
 0x4af   : > { %v609_v10 = vpop.permute.xlu1 %608 }
 0x4b0   : > { %1421 = vmatmul.msk.bf16.vlgmr.msra.gmra.mxu3 %vm484_vm5, %v609_v10 }
 0x533   : > { %v622_v11 = vpop.f32.mrf.mxu3 }
 0x534   : > { %v623_v12 = vadd.f32 %v622_v11, %v1832_v6 }
 0x536   : > { %v627_v14 = vrot.slane %v623_v12, 6 }
 0x538   : > { %v629_v15 = vadd.f32 %v627_v14, %v1839_v13  ;;  %649 = vrot.lane.b32.xlu2 %v627_v14, %s2053_s30 }
 0x53a   : > { %v1422_v16 = vmul.f32 -1.442695, %v629_v15 }
 0x53b   : > { %v624_v17 = vpop.f32.mrf.mxu3 }
 0x53c   : > { %1578 = vpow2.f32 %v1422_v16 }
 0x542   : > { %v1579_v18 = vpop.eup %1578 }
 0x543   : > { %v633_v19 = vadd.f32 1.0, %v1579_v18 }
 0x545   : > { %1580 = vrcp.f32 %v633_v19  ;;  %v645_v23 = vand.u32 2147483648, %v633_v19  ;;  %v643_v25 = vand.u32 2147483647, %v633_v19  ;;  %vm639_vm11 = vweird.f32 %v633_v19 }
 0x547   : > { %v646_v27 = vor.u32 1.1754944e-38, %v645_v23  ;;  %vm644_vm13 = vcmp.eq.f32.partialorder %v643_v25, 8.507059e+37 }
 0x54b   : > { %v1581_v20 = vpop.eup %1580 }
 0x54c   : > { %v635_v21 = vmul.f32 %v1581_v20, %v633_v19  ;;  %vm640_vm10 = vweird.f32 %v1581_v20 }
 0x54d   : > { %vm641_vm12 = vmor %vm639_vm11, %vm640_vm10 }
 0x54e   : > { %v636_v22 = vsub.f32 1.0, %v635_v21 }
 0x550   : > { %v637_v24 = vmul.f32 %v1581_v20, %v636_v22 }
 0x552   : > { %v638_v26 = vadd.f32 %v1581_v20, %v637_v24 }
 0x554   : > { %v642_v29 = vsel %vm641_vm12, %v1581_v20, %v638_v26 }
 0x555   : > { %v647_v30 = vsel %vm644_vm13, %v646_v27, %v642_v29 }
 0x556   : > { %v668_v31 = vmul.f32 %v666_v28, %v647_v30  ;;  %v659_v37 = vsub.f32 1.0, %v647_v30 }
 0x592   : > { %v650_v32 = vpop.permute.xlu2 %649 }
 0x593   : > { %v652_v33 = vmul.f32 %v650_v32, %v647_v30 }
 0x595   : > { %654 = vrot.lane.b32.xlu0 %v652_v33, %s2051_s20 }
 0x607   : > { %v655_v34 = vpop.permute.xlu0 %654 }
 0x608   : > { %v657_v35 = vadd.f32 %v655_v34, %v1839_v13 }
 0x60a   : > { %1582 = vtanh.f32 %v657_v35 }
 0x610   : > { %v1583_v36 = vpop.eup %1582 }
 0x611   : > { %661 = vrot.lane.b32.xlu1 %v1583_v36, %s2049_s21 }
 0x683   : > { %v662_v38 = vpop.permute.xlu1 %661 }
 0x684   : > { %v664_v39 = vmul.f32 %v662_v38, %v659_v37 }
 0x686   : > { %v669_v40 = vadd.f32 %v668_v31, %v664_v39 }
 0x688   : > { %v670_v41 = vpack.c.bf16 %v669_v40, %v669_v40  ;;  %v731_v3 = vrot.slane %v669_v40, 7 }
 0x68a   : > { %v672_v42 = vrot.slane %v670_v41, 1 }
 0x68c   : > { %673 = vrot.lane.b32.xlu2 %v672_v42, %s2049_s21 }
 0x6e6   : > { %v674_v43 = vpop.permute.xlu2 %673 }
 0x6e7   : > { %1423 = vmatmul.msk.bf16.vlgmr.msrb.gmra.mxu1 %vm484_vm5, %v674_v43 }
 0x764   : > { %v687_v44 = vpop.f32.mrf.mxu1 }
 0x765   : > { %v688_v45 = vadd.f32 %v687_v44, %v1832_v6 }
 0x767   : > { %v692_v46 = vrot.slane %v688_v45, 5 }
 0x769   : > { %714 = vrot.lane.b32.xlu0 %v692_v46, %s2053_s30  ;;  %v694_v48 = vadd.f32 %v692_v46, %v1839_v13 }
 0x76b   : > { %v1424_v49 = vmul.f32 -1.442695, %v694_v48 }
 0x76c   : > { %v689_v47 = vpop.f32.mrf.mxu1 }
 0x76d   : > { %1584 = vpow2.f32 %v1424_v49 }
 0x773   : > { %v1585_v50 = vpop.eup %1584 }
 0x774   : > { %v698_v51 = vadd.f32 1.0, %v1585_v50 }
 0x776   : > { %1586 = vrcp.f32 %v698_v51  ;;  %v710_v57 = vand.u32 2147483648, %v698_v51  ;;  %vm704_vm15 = vweird.f32 %v698_v51  ;;  %v708_v58 = vand.u32 2147483647, %v698_v51 }
 0x778   : > { %v711_v60 = vor.u32 1.1754944e-38, %v710_v57  ;;  %vm709_vm2 = vcmp.eq.f32.partialorder %v708_v58, 8.507059e+37 }
 0x77c   : > { %v1587_v52 = vpop.eup %1586 }
 0x77d   : > { %v700_v53 = vmul.f32 %v1587_v52, %v698_v51  ;;  %vm705_vm14 = vweird.f32 %v1587_v52 }
 0x77e   : > { %vm706_vm1 = vmor %vm704_vm15, %vm705_vm14 }
 0x77f   : > { %v701_v54 = vsub.f32 1.0, %v700_v53 }
 0x781   : > { %v702_v55 = vmul.f32 %v1587_v52, %v701_v54 }
 0x783   : > { %v703_v56 = vadd.f32 %v1587_v52, %v702_v55 }
 0x785   : > { %v707_v59 = vsel %vm706_vm1, %v1587_v52, %v703_v56  ;;  %vm1083_vm1 = vcmask 1045504  }
 0x786   : > { %v712_v62 = vsel %vm709_vm2, %v711_v60, %v707_v59  ;;  %vm1079_vm2 = vcmask 1046528  }
 0x787   : > { %v724_v7 = vsub.f32 1.0, %v712_v62  ;;  %v733_v9 = vmul.f32 %v731_v3, %v712_v62 }
 0x7db   : > { %v715_v61 = vpop.permute.xlu0 %714 }
 0x7dc   : > { %v717_v63 = vmul.f32 %v715_v61, %v712_v62 }
 0x7de   : > { %719 = vrot.lane.b32.xlu1 %v717_v63, %s2051_s20 }
 0x850   : > { %v720_v0 = vpop.permute.xlu1 %719 }
 0x851   : > { %v722_v1 = vadd.f32 %v720_v0, %v1839_v13 }
 0x853   : > { %1588 = vtanh.f32 %v722_v1 }
 0x859   : > { %v1589_v2 = vpop.eup %1588 }
 0x85a   : > { %726 = vrot.lane.b32.xlu2 %v1589_v2, %s2049_s21 }
 0x8b4   : > { %v727_v8 = vpop.permute.xlu2 %726 }
 0x8b5   : > { %v729_v10 = vmul.f32 %v727_v8, %v724_v7 }
 0x8b7   : > { %v734_v11 = vadd.f32 %v733_v9, %v729_v10 }
 0x8b9   : > { %v735_v12 = vpack.c.bf16 %v734_v11, %v734_v11  ;;  %v798_v40 = vrot.slane %v734_v11, 7 }
 0x8bb   : > { %v737_v14 = vshrl.u32 %v735_v12, 16 }
 0x8bd   : > { %v739_v15 = vrot.slane %v737_v14, 1 }
 0x8bf   : > { %740 = vrot.lane.b32.xlu0 %v739_v15, %s2049_s21 }
 0x931   : > { %v741_v16 = vpop.permute.xlu0 %740 }
 0x932   : > { %1425 = vmatmul.msk.bf16.vlgmr.msrb.gmra.mxu2 %vm484_vm5, %v741_v16 }
 0x9b5   : > { %v754_v17 = vpop.f32.mrf.mxu2 }
 0x9b6   : > { %v755_v18 = vadd.f32 %v754_v17, %v1832_v6 }
 0x9b8   : > { %v759_v19 = vrot.slane %v755_v18, 4 }
 0x9ba   : > { %781 = vrot.lane.b32.xlu1 %v759_v19, %s2053_s30  ;;  %v761_v21 = vadd.f32 %v759_v19, %v1839_v13 }
 0x9bc   : > { %v1426_v22 = vmul.f32 -1.442695, %v761_v21 }
 0x9bd   : > { %v756_v20 = vpop.f32.mrf.mxu2 }
 0x9be   : > { %1590 = vpow2.f32 %v1426_v22 }
 0x9c4   : > { %v1591_v23 = vpop.eup %1590 }
 0x9c5   : > { %v765_v24 = vadd.f32 1.0, %v1591_v23 }
 0x9c7   : > { %1592 = vrcp.f32 %v765_v24  ;;  %v777_v30 = vand.u32 2147483648, %v765_v24  ;;  %vm771_vm4 = vweird.f32 %v765_v24  ;;  %v775_v31 = vand.u32 2147483647, %v765_v24 }
 0x9c9   : > { %v778_v33 = vor.u32 1.1754944e-38, %v777_v30  ;;  %vm776_vm7 = vcmp.eq.f32.partialorder %v775_v31, 8.507059e+37 }
 0x9cd   : > { %v1593_v25 = vpop.eup %1592 }
 0x9ce   : > { %v767_v26 = vmul.f32 %v1593_v25, %v765_v24  ;;  %vm772_vm3 = vweird.f32 %v1593_v25 }
 0x9cf   : > { %vm773_vm6 = vmor %vm771_vm4, %vm772_vm3  ;;  %vm1087_vm3 = vcmask 1044480   ;;  %vm1091_vm4 = vcmask 1043456  }
 0x9d0   : > { %v768_v27 = vsub.f32 1.0, %v767_v26 }
 0x9d2   : > { %v769_v28 = vmul.f32 %v1593_v25, %v768_v27 }
 0x9d4   : > { %v770_v29 = vadd.f32 %v1593_v25, %v769_v28 }
 0x9d6   : > { %v774_v32 = vsel %vm773_vm6, %v1593_v25, %v770_v29 }
 0x9d7   : > { %v779_v35 = vsel %vm776_vm7, %v778_v33, %v774_v32 }
 0x9d8   : > { %v791_v41 = vsub.f32 1.0, %v779_v35  ;;  %v800_v43 = vmul.f32 %v798_v40, %v779_v35 }
 0xa2c   : > { %v782_v34 = vpop.permute.xlu1 %781 }
 0xa2d   : > { %v784_v36 = vmul.f32 %v782_v34, %v779_v35 }
 0xa2f   : > { %786 = vrot.lane.b32.xlu2 %v784_v36, %s2051_s20 }
 0xa89   : > { %v787_v37 = vpop.permute.xlu2 %786 }
 0xa8a   : > { %v789_v38 = vadd.f32 %v787_v37, %v1839_v13 }
 0xa8c   : > { %1594 = vtanh.f32 %v789_v38 }
 0xa92   : > { %v1595_v39 = vpop.eup %1594 }
 0xa93   : > { %793 = vrot.lane.b32.xlu0 %v1595_v39, %s2049_s21 }
 0xb05   : > { %v794_v42 = vpop.permute.xlu0 %793 }
 0xb06   : > { %v796_v44 = vmul.f32 %v794_v42, %v791_v41 }
 0xb08   : > { %v801_v45 = vadd.f32 %v800_v43, %v796_v44 }
 0xb0a   : > { %v802_v46 = vpack.c.bf16 %v801_v45, %v801_v45  ;;  %v863_v1 = vrot.slane %v801_v45, 7  ;;  %v1505_v45 = vld [vmem:[%s2040_s5 + $0x8] sm:$0xff] }
 0xb0b   : > { %1028 = vmatpush.bf16.msra.mxu2 %v1505_v45 }
 0xb0c   : > { %v804_v47 = vrot.slane %v802_v46, 2  ;;  %v1004_v46 = vshrl.u32 %v1825_v5, 16 }
 0xb0e   : > { %805 = vrot.lane.b32.xlu1 %v804_v47, %s2049_s21  ;;  %v1504_v47 = vld [vmem:[%s2040_s5] sm:$0xff] }
 0xb0f   : > { %1029 = vmatpush.bf16.msra.mxu2 %v1504_v47 }
 0xb80   : > { %v806_v48 = vpop.permute.xlu1 %805 }
 0xb81   : > { %1427 = vmatmul.msk.bf16.vlgmr.msrb.gmra.mxu3 %vm484_vm5, %v806_v48  ;;  %v1006_v48 = vrot.slane %v1004_v46, 3  ;;  %v1506_v46 = vld [vmem:[%s2043_s8] sm:$0xff] }
 0xb83   : > { %1441 = vmatmul.msk.bf16.vlgmr.msra.gmra.mxu2 %vm458_vm0, %v1006_v48 }
 0xc04   : > { %v819_v49 = vpop.f32.mrf.mxu3 }
 0xc05   : > { %v820_v50 = vadd.f32 %v819_v49, %v1832_v6 }
 0xc07   : > { %v824_v51 = vrot.slane %v820_v50, 3 }
 0xc09   : > { %v826_v52 = vadd.f32 %v824_v51, %v1839_v13  ;;  %846 = vrot.lane.b32.xlu2 %v824_v51, %s2053_s30 }
 0xc0b   : > { %v1428_v53 = vmul.f32 -1.442695, %v826_v52 }
 0xc0c   : > { %v821_v54 = vpop.f32.mrf.mxu3 }
 0xc0d   : > { %1596 = vpow2.f32 %v1428_v53 }
 0xc13   : > { %v1597_v55 = vpop.eup %1596 }
 0xc14   : > { %v830_v56 = vadd.f32 1.0, %v1597_v55 }
 0xc16   : > { %1598 = vrcp.f32 %v830_v56  ;;  %v842_v60 = vand.u32 2147483648, %v830_v56  ;;  %v840_v62 = vand.u32 2147483647, %v830_v56  ;;  %vm836_vm9 = vweird.f32 %v830_v56 }
 0xc18   : > { %v843_v0 = vor.u32 1.1754944e-38, %v842_v60  ;;  %vm841_vm11 = vcmp.eq.f32.partialorder %v840_v62, 8.507059e+37  ;;  %v1085_v60 = vrot.slane %v1821_v4, 3 }
 0xc1a   : > { %v1088_v62 = vsel %vm1087_vm3, %v1085_v60, 0.0 }
 0xc1c   : > { %v1599_v57 = vpop.eup %1598 }
 0xc1d   : > { %v832_v58 = vmul.f32 %v1599_v57, %v830_v56  ;;  %vm837_vm8 = vweird.f32 %v1599_v57  ;;  %v1081_v56 = vrot.slane %v1821_v4, 2 }
 0xc1e   : > { %vm838_vm10 = vmor %vm836_vm9, %vm837_vm8 }
 0xc1f   : > { %v833_v59 = vsub.f32 1.0, %v832_v58  ;;  %v1564_v58 = vld [vmem:[%s2042_s7] ss:$0 sm:$0xff] }
 0xc21   : > { %v834_v61 = vmul.f32 %v1599_v57, %v833_v59  ;;  %v1077_v59 = vrot.slane %v1821_v4, 1 }
 0xc23   : > { %v835_v63 = vadd.f32 %v1599_v57, %v834_v61  ;;  %v1080_v61 = vsel %vm1079_vm2, %v1077_v59, 0.0 }
 0xc25   : > { %v839_v2 = vsel %vm838_vm10, %v1599_v57, %v835_v63  ;;  %v1084_v57 = vsel %vm1083_vm1, %v1081_v56, 0.0  ;;  %v1031_v63 = vpop.f32.mrf.mxu2  ;;  %vm1106_vm10 = vcmask 523264   ;;  %vm1330_vm1 = vcmask 8192  }
 0xc26   : > { %v844_v3 = vsel %vm841_vm11, %v843_v0, %v839_v2  ;;  %v1003_v2 = vld [vmem:[%s2041_s6] sm:$0x1]  ;;  %vm1108_vm11 = vcmask 785408  }
 0xc27   : > { %v865_v7 = vmul.f32 %v863_v1, %v844_v3  ;;  %v856_v14 = vsub.f32 1.0, %v844_v3 }
 0xc2d   : > { %v1033_v1 = vpop.f32.mrf.mxu2 }
 0xc63   : > { %v847_v8 = vpop.permute.xlu2 %846 }
 0xc64   : > { %v849_v9 = vmul.f32 %v847_v8, %v844_v3  ;;  %v1919_v3 = vadd.f32 %v1031_v63, %v1003_v2 }
 0xc66   : > { %851 = vrot.lane.b32.xlu0 %v849_v9, %s2051_s20 }
 0xcd8   : > { %v852_v10 = vpop.permute.xlu0 %851 }
 0xcd9   : > { %v854_v11 = vadd.f32 %v852_v10, %v1839_v13 }
 0xcdb   : > { %1600 = vtanh.f32 %v854_v11 }
 0xce1   : > { %v1601_v12 = vpop.eup %1600 }
 0xce2   : > { %858 = vrot.lane.b32.xlu1 %v1601_v12, %s2049_s21 }
 0xd54   : > { %v859_v15 = vpop.permute.xlu1 %858 }
 0xd55   : > { %v861_v16 = vmul.f32 %v859_v15, %v856_v14  ;;  %v1513_v14 = vld [vmem:[%s2043_s8 + $0x38] sm:$0xff] }
 0xd56   : > { %1199 = vmatpush.bf16.msra.mxu3 %v1513_v14 }
 0xd57   : > { %v866_v17 = vadd.f32 %v865_v7, %v861_v16  ;;  %v1035_v7 = vld [vmem:[%s2042_s7] sm:$0x1]  ;;  %v1089_v16 = vrot.slane %v1821_v4, 4 }
 0xd58   : > { %v1036_v8 = vadd.f32 %v1035_v7, %v1919_v3 }
 0xd59   : > { %v867_v18 = vpack.c.bf16 %v866_v17, %v866_v17  ;;  %v930_v49 = vrot.slane %v866_v17, 7  ;;  %v1512_v17 = vld [vmem:[%s2043_s8 + $0x30] sm:$0xff] }
 0xd5a   : > { %v1442_v9 = vmul.f32 -1.442695, %v1036_v8  ;;  %1200 = vmatpush.bf16.msra.mxu3 %v1512_v17 }
 0xd5b   : > { %v869_v19 = vshrl.u32 %v867_v18, 16  ;;  %v1515_v18 = vld [vmem:[%s2043_s8 + $0x48] sm:$0xff] }
 0xd5c   : > { %1218 = vmatpush.bf16.msra.mxu0 %v1515_v18 }
 0xd5d   : > { %v871_v20 = vrot.slane %v869_v19, 2  ;;  %v1514_v19 = vld [vmem:[%s2043_s8 + $0x40] sm:$0xff] }
 0xd5f   : > { %872 = vrot.lane.b32.xlu2 %v871_v20, %s2049_s21  ;;  %v1092_v20 = vsel %vm1091_vm4, %v1089_v16, 0.0 }
 0xd60   : > { %1219 = vmatpush.bf16.msra.mxu0 %v1514_v19 }
 0xdb9   : > { %v873_v21 = vpop.permute.xlu2 %872 }
 0xdba   : > { %1429 = vmatmul.msk.bf16.vlgmr.msrb.gmra.mxu0 %vm484_vm5, %v873_v21 }
 0xe37   : > { %v886_v22 = vpop.f32.mrf.mxu0 }
 0xe38   : > { %v887_v23 = vadd.f32 %v886_v22, %v1832_v6  ;;  %v1511_v22 = vld [vmem:[%s2043_s8 + $0x28] sm:$0xff] }
 0xe39   : > { %1201 = vmatpush.bf16.msra.mxu3 %v1511_v22 }
 0xe3a   : > { %v891_v24 = vrot.slane %v887_v23, 2  ;;  %v1111_v23 = vpack.c.bf16 %v1092_v20, %v1092_v20 }
 0xe3c   : > { %913 = vrot.lane.b32.xlu0 %v891_v24, %s2053_s30  ;;  %v893_v26 = vadd.f32 %v891_v24, %v1839_v13  ;;  %1483 = vmatmul.msk.bf16.vlgmr.msra.gmra.mxu0 %vm458_vm0, %v1111_v23 }
 0xe3e   : > { %v1430_v27 = vmul.f32 -1.442695, %v893_v26  ;;  %v1510_v26 = vld [vmem:[%s2043_s8 + $0x20] sm:$0xff] }
 0xe3f   : > { %v888_v25 = vpop.f32.mrf.mxu0  ;;  %1202 = vmatpush.bf16.msra.mxu3 %v1510_v26 }
 0xe40   : > { %1602 = vpow2.f32 %v1430_v27 }
 0xe46   : > { %v1603_v28 = vpop.eup %1602 }
 0xe47   : > { %v897_v29 = vadd.f32 1.0, %v1603_v28 }
 0xe49   : > { %1604 = vrcp.f32 %v897_v29  ;;  %v909_v35 = vand.u32 2147483648, %v897_v29  ;;  %vm903_vm13 = vweird.f32 %v897_v29  ;;  %v907_v36 = vand.u32 2147483647, %v897_v29 }
 0xe4b   : > { %v910_v38 = vor.u32 1.1754944e-38, %v909_v35  ;;  %vm908_vm15 = vcmp.eq.f32.partialorder %v907_v36, 8.507059e+37 }
 0xe4f   : > { %v1605_v30 = vpop.eup %1604 }
 0xe50   : > { %v899_v31 = vmul.f32 %v1605_v30, %v897_v29  ;;  %vm904_vm12 = vweird.f32 %v1605_v30 }
 0xe51   : > { %vm905_vm14 = vmor %vm903_vm13, %vm904_vm12 }
 0xe52   : > { %v900_v32 = vsub.f32 1.0, %v899_v31  ;;  %v1509_v31 = vld [vmem:[%s2043_s8 + $0x18] sm:$0xff] }
 0xe53   : > { %1203 = vmatpush.bf16.msra.mxu3 %v1509_v31 }
 0xe54   : > { %v901_v33 = vmul.f32 %v1605_v30, %v900_v32 }
 0xe56   : > { %v902_v34 = vadd.f32 %v1605_v30, %v901_v33 }
 0xe58   : > { %v906_v37 = vsel %vm905_vm14, %v1605_v30, %v902_v34 }
 0xe59   : > { %v911_v40 = vsel %vm908_vm15, %v910_v38, %v906_v37  ;;  %v1508_v37 = vld [vmem:[%s2043_s8 + $0x10] sm:$0xff]  ;;  %vm1228_vm15 = vcmask 195584  }
 0xe5a   : > { %v923_v50 = vsub.f32 1.0, %v911_v40  ;;  %v932_v52 = vmul.f32 %v930_v49, %v911_v40  ;;  %1204 = vmatpush.bf16.msra.mxu3 %v1508_v37 }
 0xeae   : > { %v914_v39 = vpop.permute.xlu0 %913 }
 0xeaf   : > { %v916_v41 = vmul.f32 %v914_v39, %v911_v40 }
 0xeb1   : > { %918 = vrot.lane.b32.xlu1 %v916_v41, %s2051_s20  ;;  %v1507_v41 = vld [vmem:[%s2043_s8 + $0x8] sm:$0xff] }
 0xeb2   : > { %1205 = vmatpush.bf16.msra.mxu3 %v1507_v41 }
 0xeb6   : > { %1206 = vmatpush.bf16.msra.mxu3 %v1506_v46 }
 0xeb9   : > { %1094 = vrot.lane.b32.xlu1 %v1080_v61, %s2051_s20  ;;  %s2063_s20 = smov 32   ;;  %v1221_v63 = vpop.f32.mrf.mxu0 }
 0xec1   : > { %v1223_v2 = vpop.f32.mrf.mxu0 }
 0xf23   : > { %v919_v42 = vpop.permute.xlu1 %918 }
 0xf24   : > { %v921_v43 = vadd.f32 %v919_v42, %v1839_v13 }
 0xf26   : > { %1606 = vtanh.f32 %v921_v43 }
 0xf27   : > { %1608 = vpow2.f32 %v1442_v9 }
 0xf2b   : > { %v1095_v36 = vpop.permute.xlu1 %1094 }
 0xf2c   : > { %v1607_v44 = vpop.eup %1606  ;;  %v1105_v40 = vsel %vm458_vm0, %v1821_v4, %v1095_v36 }
 0xf2d   : > { %925 = vrot.lane.b32.xlu2 %v1607_v44, %s2049_s21  ;;  %v1609_v10 = vpop.eup %1608 }
 0xf2e   : > { %v1040_v11 = vadd.f32 1.0, %v1609_v10  ;;  %v1565_v10 = vld [vmem:[%s2044_s9] ss:$0 sm:$0xff] }
 0xf30   : > { %1610 = vrcp.f32 %v1040_v11  ;;  %vm1046_vm6 = vweird.f32 %v1040_v11  ;;  %v1052_v27 = vand.u32 2147483648, %v1040_v11  ;;  %v1050_v29 = vand.u32 2147483647, %v1040_v11 }
 0xf32   : > { %v1053_v33 = vor.u32 1.1754944e-38, %v1052_v27  ;;  %vm1051_vm9 = vcmp.eq.f32.partialorder %v1050_v29, 8.507059e+37  ;;  %v1518_v27 = vld [vmem:[%s2046_s11 + $0x10] sm:$0xff] }
 0xf35   : > { %1098 = vrot.lane.b32.xlu2 %v1084_v57, %s1688_s16  ;;  %s2064_s16 = smov 112  }
 0xf36   : > { %v1611_v12 = vpop.eup %1610 }
 0xf37   : > { %v1042_v15 = vmul.f32 %v1611_v12, %v1040_v11  ;;  %vm1047_vm7 = vweird.f32 %v1611_v12 }
 0xf38   : > { %vm1048_vm8 = vmor %vm1046_vm6, %vm1047_vm7 }
 0xf39   : > { %v1043_v21 = vsub.f32 1.0, %v1042_v15  ;;  %v1226_v15 = vld [vmem:[%s2045_s10] sm:$0xff] }
 0xf3b   : > { %v1044_v24 = vmul.f32 %v1611_v12, %v1043_v21  ;;  %v1242_v21 = vld [vmem:[%s2046_s11 + $0x18] sm:$0xf] }
 0xf3c   : > { %v1304_v23 = vunpack.c.l.b16 %v1242_v21 }
 0xf3d   : > { %1058 = vrot.lane.b32.xlu2 %v1564_v58, %s2053_s30  ;;  %v1045_v28 = vadd.f32 %v1611_v12, %v1044_v24 }
 0xf3e   : > { %v1306_v24 = vpack.c.b16 %v1304_v23, %v1304_v23 }
 0xf3f   : > { %v1049_v35 = vsel %vm1048_vm8, %v1611_v12, %v1045_v28 }
 0xf40   : > { %v1954_v38 = vsel %vm1051_vm9, %v1053_v33, %v1049_v35  ;;  %v1312_v26 = vsel %vm1091_vm4, %v1306_v24, 0 }
 0xf41   : > { %1320 = vmatpush.bf16.msrb.mxu0 %v1312_v26 }
 0xf45   : > { %1321 = vmatpush.bf16.msrb.mxu0 %v1518_v27 }
 0xf87   : > { %v926_v51 = vpop.permute.xlu2 %925 }
 0xf88   : > { %v928_v53 = vmul.f32 %v926_v51, %v923_v50 }
 0xf8a   : > { %v1901_v54 = vadd.f32 %v932_v52, %v928_v53 }
 0xf8c   : > { %v934_v55 = vpack.c.bf16 %v1901_v54, %v1901_v54 }
 0xf8e   : > { %v936_v5 = vrot.slane %v934_v55, 3 }
 0xf8f   : > { %v1099_v25 = vpop.permute.xlu2 %1098 }
 0xf90   : > { %937 = vrot.lane.b32.xlu0 %v936_v5, %s2049_s21  ;;  %s2062_s21 = smov 96   ;;  %v1107_v44 = vsel %vm1106_vm10, %v1105_v40, %v1099_v25  ;;  %v995_v40 = vrot.slane %v1901_v54, 7 }
 0xf97   : > { %v1059_v39 = vpop.permute.xlu2 %1058 }
 0xf98   : > { %1102 = vrot.lane.b32.xlu0 %v1088_v62, %s2053_s30  ;;  %v1061_v42 = vmul.f32 %v1059_v39, %v1954_v38  ;;  %v1517_v39 = vld [vmem:[%s2046_s11 + $0x8] sm:$0xff]  ;;  %s429_s30 = sand.u32 1, %s1674_s26  }
 0xf99   : > { %1264 = vmatpush.bf16.msrb.mxu1 %v1517_v39  ;;  %s1333_s1 = scalar_lea.sflag [#allocation3], %s429_s30 }
0x1002   : > { %v938_v0 = vpop.permute.xlu0 %937 }
0x1003   : > { %1431 = vmatmul.msk.bf16.vlgmr.msra.gmra.mxu1 %vm484_vm5, %v938_v0 }
0x100a   : > { %v1103_v43 = vpop.permute.xlu0 %1102 }
0x100b   : > { %v1109_v45 = vsel %vm1108_vm11, %v1107_v44, %v1103_v43 }
0x100c   : > { %v1110_v4 = vpack.c.bf16 %v1109_v45, %v1109_v45 }
0x100e   : > { %1207 = vmatmul.bf16.vlgmr.msra.gmra.mxu3 %v1110_v4 }
0x1080   : > { %v951_v30 = vpop.f32.mrf.mxu1 }
0x1081   : > { %v952_v32 = vadd.f32 %v951_v30, %v1832_v6 }
0x1083   : > { %v956_v34 = vrot.slane %v952_v32, 1  ;;  %v1068_v32 = vsub.f32 1.0, %v1954_v38 }
0x1085   : > { %978 = vrot.lane.b32.xlu1 %v956_v34, %s2062_s21  ;;  %v958_v47 = vadd.f32 %v956_v34, %v1839_v13  ;;  %v1074_v34 = vmul.f32 0.0, %v1954_v38  ;;  %s1341_s21 = scalar_lea.hbm %s2048_s13, %s1780_s29 }
0x1086   : > { %s1345_s0 = sshll.u32 %s1341_s21, 4  ;;  %s1346_s0 = int_to_ptr.hbm [resolvable:$true] %s1345_s0 }
0x1087   : > { %v1432_v48 = vmul.f32 -1.442695, %v958_v47 }
0x1088   : > { %v953_v6 = vpop.f32.mrf.mxu1 }
0x1089   : > { %1612 = vpow2.f32 %v1432_v48 }
0x108d   : > { %1063 = vrot.lane.b32.xlu1 %v1061_v42, %s2063_s20 }
0x108f   : > { %v1613_v49 = vpop.eup %1612 }
0x1090   : > { %v962_v50 = vadd.f32 1.0, %v1613_v49 }
0x1091   : > { %v1208_v8 = vpop.f32.mrf.mxu3 }
0x1092   : > { %1614 = vrcp.f32 %v962_v50  ;;  %v974_v56 = vand.u32 2147483648, %v962_v50  ;;  %vm968_vm12 = vweird.f32 %v962_v50  ;;  %v972_v57 = vand.u32 2147483647, %v962_v50 }
0x1093   : > { %v1209_v11 = vadd.f32 %v1565_v10, %v1208_v8 }
0x1094   : > { %v975_v59 = vor.u32 1.1754944e-38, %v974_v56  ;;  %vm973_vm14 = vcmp.eq.f32.partialorder %v972_v57, 8.507059e+37 }
0x1095   : > { %v1222_v12 = vadd.f32 %v1221_v63, %v1209_v11 }
0x1097   : > { %v1225_v14 = vmax.f32 %v1222_v12, 0.0 }
0x1098   : > { %v1615_v51 = vpop.eup %1614 }
0x1099   : > { %v964_v52 = vmul.f32 %v1615_v51, %v962_v50  ;;  %vm969_vm0 = vweird.f32 %v1615_v51  ;;  %v1210_v9 = vpop.f32.mrf.mxu3  ;;  %v1227_v16 = vmul.f32 %v1226_v15, %v1225_v14 }
0x109a   : > { %vm970_vm13 = vmor %vm968_vm12, %vm969_vm0 }
0x109b   : > { %v965_v53 = vsub.f32 1.0, %v964_v52 }
0x109d   : > { %v966_v55 = vmul.f32 %v1615_v51, %v965_v53  ;;  %v1328_v53 = vld [vmem:[%s2047_s12] sm:$0x1] }
0x109f   : > { %v967_v5 = vadd.f32 %v1615_v51, %v966_v55 }
0x10a1   : > { %v971_v58 = vsel %vm970_vm13, %v1615_v51, %v967_v5 }
0x10a2   : > { %v976_v60 = vsel %vm973_vm14, %v975_v59, %v971_v58 }
0x10a3   : > { %v988_v6 = vsub.f32 1.0, %v976_v60  ;;  %v997_v38 = vmul.f32 %v995_v40, %v976_v60 }
0x10f7   : > { %v979_v61 = vpop.permute.xlu1 %978 }
0x10f8   : > { %v981_v62 = vmul.f32 %v979_v61, %v976_v60 }
0x10fa   : > { %983 = vrot.lane.b32.xlu0 %v981_v62, %s2063_s20  ;;  %s1634_s20 = sshra.s32 %s1346_s0, 4  ;;  %s1635_s20 = int_to_ptr.hbm [resolvable:$true] %s1634_s20 }
0x10fb   : > { %s1636_s29 = scalar_lea.hbm %s1635_s20, 1  ;;  %p1641_p0 = scmp.lt.s32.totalorder %s1635_s20, %s2048_s13 }
0x10fc   : > { %p1637_p11 = scmp.ne.s32.totalorder %s1635_s20, %s1636_s29  ;;  %p1642_p1 = scmp.lt.s32.totalorder %s1640_s24, %s1636_s29 }
0x10fe   : > { %p1638_p12 = pnand %p1637_p11, %p1797_p5  ;;  %p1643_p2 = por %p1642_p1, %p1641_p0 }
0x10ff   : > { %v1064_v0 = vpop.permute.xlu1 %1063 }
0x1100   : > { %v1066_v1 = vadd.f32 %v1064_v0, %v1919_v3  ;;  %v1229_v3 = vsel %vm1228_vm15, %v1227_v16, -inf  ;;  %p1639_p13 = pneg %p1638_p12 }
0x1101   : > { %v1230_v17 = vrot.slane %v1229_v3, 4 }
0x1102   : > { %1616 = vtanh.f32 %v1066_v1  ;;  %p1644_p3 = pnand %p1643_p2, %p1639_p13 }
0x1103   : > { %v1231_v18 = vmax.f32 %v1229_v3, %v1230_v17 }
0x1105   : > { %v1232_v19 = vrot.slane %v1231_v18, 2 }
0x1107   : > { %v1233_v20 = vmax.f32 %v1231_v18, %v1232_v19 }
0x1108   : > { %v1617_v7 = vpop.eup %1616 }
0x1109   : > { %1070 = vrot.lane.b32.xlu0 %v1617_v7, %s2064_s16  ;;  %v1234_v22 = vrot.slane %v1233_v20, 1 }
0x110b   : > { %v1235_v25 = vmax.f32 %v1233_v20, %v1234_v22 }
0x110d   : > { %v1298_v28 = vpack.c.bf16 %v1235_v25, %v1235_v25 }
0x110f   : > { %1498 = vmatmul.msk.bf16.vlgmr.msrb.gmra.mxu0 %vm1228_vm15, %v1298_v28 }
0x116c   : > { %v984_v29 = vpop.permute.xlu0 %983 }
0x116d   : > { %v986_v30 = vadd.f32 %v984_v29, %v1839_v13  ;;  %v1516_v13 = vld [vmem:[%s2046_s11] sm:$0xff] }
0x116e   : > { %1292 = vmatpush.bf16.msrb.mxu2 %v1516_v13 }
0x116f   : > { %1618 = vtanh.f32 %v986_v30 }
0x1175   : > { %v1619_v31 = vpop.eup %1618 }
0x1176   : > { %990 = vrot.lane.b32.xlu2 %v1619_v31, %s2064_s16 }
0x117b   : > { %v1071_v33 = vpop.permute.xlu0 %1070 }
0x117c   : > { %v1073_v35 = vmul.f32 %v1071_v33, %v1068_v32 }
0x117e   : > { %v1075_v36 = vadd.f32 %v1074_v34, %v1073_v35 }
0x1180   : > { %v1244_v37 = vpack.c.bf16 %v1075_v36, %v1075_v36 }
0x1182   : > { %1246 = vrot.lane.b32.xlu2 %v1244_v37, %s2064_s16 }
0x118c   : > { %v1323_v47 = vpop.f32.mrf.mxu0 }
0x1194   : > { %v1325_v48 = vpop.f32.mrf.mxu0 }
0x11d0   : > { %v991_v41 = vpop.permute.xlu2 %990 }
0x11d1   : > { %v993_v42 = vmul.f32 %v991_v41, %v988_v6 }
0x11d3   : > { %v998_v43 = vadd.f32 %v997_v38, %v993_v42 }
0x11d5   : > { %v1243_v44 = vpack.c.bf16 %v998_v43, %v998_v43 }
0x11d7   : > { %v1271_v45 = vshrl.u32 %v1243_v44, 16 }
0x11d9   : > { %v1273_v46 = vrot.slane %v1271_v45, 3 }
0x11db   : > { %1274 = vrot.lane.b32.xlu1 %v1273_v46, %s2064_s16  ;;  %s430_s16 = scalar_lea.vmem [#allocation2], %s429_s30 }
0x11dc   : > { %v1247_v4 = vpop.permute.xlu2 %1246  ;;  %s1343_s15 = sshll.u32 %s430_s16, 4  ;;  %s1344_s15 = int_to_ptr.vmem [resolvable:$true] %s1343_s15 }
0x11dd   : > { %1488 = vmatmul.msk.bf16.vlgmr.msrb.gmra.mxu1 %vm484_vm5, %v1247_v4 }
0x124d   : > { %v1275_v49 = vpop.permute.xlu1 %1274 }
0x124e   : > { %1493 = vmatmul.msk.bf16.vlgmr.msrb.gmra.mxu2 %vm484_vm5, %v1275_v49 }
0x125a   : > { %v1266_v54 = vpop.f32.mrf.mxu1 }
0x1262   : > { %v1268_v50 = vpop.f32.mrf.mxu1 }
0x12d1   : > { %v1294_v51 = vpop.f32.mrf.mxu2 }
0x12d2   : > { %v1295_v52 = vadd.f32 %v1294_v51, %v1266_v54 }
0x12d4   : > { %v1327_v55 = vadd.f32 %v1323_v47, %v1295_v52 }
0x12d6   : > { %v1329_v5 = vadd.f32 %v1328_v53, %v1327_v55 }
0x12d8   : > { %1331 = vst.msk [vmem:[%s430_s16] sm:$0x1] %vm1330_vm1, %v1329_v5 }
0x12d9   : > { %v1296_v56 = vpop.f32.mrf.mxu2 }
0x12da   : > { %1647 = shalt.err (!%p1644_p3)
}
0x12db   : > { %1519 = dma.vmem_to_hbm [thread:$0]  (%p1797_p5), %s1344_s15, 16, %s1346_s0, %s1333_s1  }
0x12dc PF: > { %p1525_p4 = scmp.ge.s32.totalorder %s1682_s28, 2  ;;  %s1357_s30 = sand.u32 1, %s1670_s25  }
0x12dd   : > { %s1358_s16 = scalar_lea.sflag [#allocation3], %s1357_s30 }
0x12de   : > { %p1522_p7 = pnand %p1525_p4, %p1801_p6 }
0x12e0   : > { %p1523_p8 = pneg %p1522_p7 }
0x12e2   : > { %1665 = dma.done.wait (%p1523_p8), %s1358_s16, 16  }
0x12e3   : > { %1667 = vsyncadd (%p1523_p8), %s1358_s16, 4294967280  ;;  %p23_p9 = scmp.ge.s32.totalorder %s1784_s14, 4   ;;  %s2065_s25 = smov %s1674_s26 }
0x12e4   : > { %s2066_s26 = smov %s1678_s27  ;;  %s2067_s27 = smov %s1795_s17 }
0x12e5   : > { %s2068_s28 = smov %s1784_s14  ;;  %25 = sbr.rel (!%p23_p9) target bundleno = 7 (0x7), region = 107 }
0x12ea   :  { %1363 = vsyncpa [#allocation3], 1 }
0x12eb   :  { %1365 = vsyncpa [#allocation3 + $0x1], 1 }

</bundles_post_ra>
